<compile_context>
chip_gen: v5e
topology: v5e:2x2
jax: 0.10.0
libtpu: 0.0.40
codegen_flags: <defaults>
</compile_context>

<pallas_src>
import functools

import jax
import jax.numpy as jnp
from jax.experimental import pallas as pl
from jax.experimental.pallas import tpu as pltpu

EPS = 1e-5


# --------------------------------------------------------------------------- #
# Fused single-HBM-pass kernel: full-L channel tiles.                          #
# --------------------------------------------------------------------------- #
def _dual_bn_fused_kernel(x_ref, rows_ref, g_ref, b_ref, out_ref, *, eps, inv_nl):
    xf = x_ref[...].astype(jnp.float32)                   # (N, tc, L)
    lf = float(x_ref.shape[2])

    # One-pass per-channel stats, shifted by the per-channel tile mean so the
    # E[(x-s)^2] - (mean_d - s)^2 form does not catastrophically cancel.
    sx = jnp.sum(xf, axis=2, keepdims=True)               # (N, tc, 1)
    shift = jnp.sum(sx, axis=0, keepdims=True) * inv_nl   # (1, tc, 1)
    xc = xf - shift
    sxx = jnp.sum(xc * xc, axis=2, keepdims=True)         # (N, tc, 1)
    sxc = sx - lf * shift                                  # (N, tc, 1)

    rows = rows_ref[...]                                   # (N, 4)
    w0 = rows[:, 0:1][..., None]                           # (N,1,1) tof stats weight
    w1 = rows[:, 1:2][..., None]                           # (N,1,1) swi stats weight
    c0 = rows[:, 2:3][..., None]                           # (N,1,1) tof-only select
    c1 = rows[:, 3:4][..., None]                           # (N,1,1) swi select (wins)

    mc0 = jnp.sum(sxc * w0, axis=0, keepdims=True)         # mean0 - shift
    e0 = jnp.sum(sxx * w0, axis=0, keepdims=True)
    mc1 = jnp.sum(sxc * w1, axis=0, keepdims=True)
    e1 = jnp.sum(sxx * w1, axis=0, keepdims=True)
    var0 = jnp.maximum(e0 - mc0 * mc0, 0.0)                # biased variance
    var1 = jnp.maximum(e1 - mc1 * mc1, 0.0)

    g = g_ref[...]                                         # (2, tc, 1)
    b = b_ref[...]
    s0 = jax.lax.rsqrt(var0 + eps) * g[0:1]
    s1 = jax.lax.rsqrt(var1 + eps) * g[1:2]
    b0 = b[0:1] - (shift + mc0) * s0
    b1 = b[1:2] - (shift + mc1) * s1

    scale = c0 * s0 + c1 * s1                              # (N, tc, 1); 0 if inactive
    bias = c0 * b0 + c1 * b1
    # Final pass reads the original-dtype tile (per-vreg upconvert inside the
    # multiply) so the full-size f32 copy's live range ends at the stats.
    out_ref[...] = (x_ref[...] * scale + bias).astype(out_ref.dtype)


# --------------------------------------------------------------------------- #
# Split path (large N*L): pass 1 accumulates per-channel/domain sums over an   #
# L-tiled grid; pass 2 applies the fused per-channel scale/bias.               #
# --------------------------------------------------------------------------- #
def _stats_kernel(x_ref, rows_ref, stat_ref):
    l = pl.program_id(1)
    xf = x_ref[...].astype(jnp.float32)                    # (N, tc, tl)
    sx = jnp.sum(xf, axis=2, keepdims=True)                # (N, tc, 1)
    sxx = jnp.sum(xf * xf, axis=2, keepdims=True)

    rows = rows_ref[...]                                   # (N, 4)
    w0 = rows[:, 0:1][..., None]
    w1 = rows[:, 1:2][..., None]
    part = jnp.concatenate(
        [jnp.sum(sx * w0, axis=0),                         # (tc, 1) each
         jnp.sum(sxx * w0, axis=0),
         jnp.sum(sx * w1, axis=0),
         jnp.sum(sxx * w1, axis=0)], axis=1)               # (tc, 4)

    @pl.when(l == 0)
    def _init():
        stat_ref[...] = part

    @pl.when(l != 0)
    def _acc():
        stat_ref[...] += part


def _norm_kernel(x_ref, rows_ref, sb_ref, out_ref):
    rows = rows_ref[...]                                   # (N, 4)
    c0 = rows[:, 2:3][..., None]                           # (N, 1, 1)
    c1 = rows[:, 3:4][..., None]
    sb = sb_ref[...]                                       # (tc, 4)
    s0 = sb[:, 0:1][None]                                  # (1, tc, 1)
    b0 = sb[:, 1:2][None]
    s1 = sb[:, 2:3][None]
    b1 = sb[:, 3:4][None]
    scale = c0 * s0 + c1 * s1                              # (N, tc, 1)
    bias = c0 * b0 + c1 * b1
    out_ref[...] = (x_ref[...] * scale + bias).astype(out_ref.dtype)


# --------------------------------------------------------------------------- #
# Tile / VMEM sizing.                                                          #
# --------------------------------------------------------------------------- #
def _vmem_budget():
    """(vmem_limit_bytes, solver_budget_bytes), generation-aware."""
    try:
        cap = int(pltpu.get_tpu_info().vmem_capacity_bytes)
    except Exception:
        cap = 64 * 1024 * 1024          # conservative (v7x-sized) fallback
    # ~2/3 of physical (≈42 MiB on v7x, ≈85 MiB on v5e/v6e), capped at 96 MiB.
    limit = min(cap * 2 // 3, 96 * 1024 * 1024)
    budget = int(limit * 0.8)           # headroom for Mosaic internals/spill
    return limit, budget


def _pick_tc(N, C, L, itemsize, budget):
    """Channel tile for the fused kernel, or None if even tc=8 cannot fit."""
    # Per channel: double-buffered x + out tiles plus ~2 full-tile f32
    # temporaries (upcast + centered copy) created inside the kernel.
    per_c = (4 * itemsize + 8) * N * L
    if C % 8 == 0:
        divisors = [d for d in range(8, C + 1, 8) if C % d == 0]
    else:
        divisors = [C]                  # block == full dim is always legal
    fitting = [d for d in divisors if d * per_c <= budget]
    if not fitting:
        return None                     # caller falls back to the split path
    # ~1 MiB tile floor: below that, extra grid steps stop paying for themselves.
    min_tile_c = max(1, (1 << 20) // max(1, N * L * itemsize))
    floor = min(max(fitting[0], min_tile_c), fitting[-1])
    usable = [d for d in fitting if d >= floor] or fitting
    # Prefer >=8 even steps (>=4 per v7x core), then >=4, then >=2, then any;
    # within a tier take the largest tile.
    for min_steps, need_even in ((8, True), (4, True), (2, True), (1, False)):
        cands = [d for d in usable
                 if C // d >= min_steps and (not need_even or (C // d) % 2 == 0)]
        if cands:
            return max(cands)
    return fitting[-1]


def _pick_split_tiles(N, C, L, itemsize, budget):
    """(tc, tl) for the two-pass path; every (N, tc, tl) tile must fit VMEM."""
    c_divs = ([d for d in range(8, C + 1, 8) if C % d == 0]
              if C % 8 == 0 else [C])
    l_divs = ([d for d in range(128, L + 1, 128) if L % d == 0]
              if L % 128 == 0 else [L])
    per_elem = 4 * itemsize + 8
    best = None
    for tc in c_divs:
        for tl in l_divs:
            if N * tc * tl * per_elem <= budget:
                key = (N * tc * tl, tl)          # biggest tile, lane-dense tiebreak
                if best is None or key > best[0]:
                    best = (key, tc, tl)
    if best is None:
        raise ValueError("MyBatchNorm1d: even an (N, 8, 128) tile does not fit the "
                         "VMEM budget; reduce N or L, or use bf16 inputs.")
    return best[1], best[2]


# --------------------------------------------------------------------------- #
# pallas_call wrappers.                                                        #
# --------------------------------------------------------------------------- #
def _fused_call(x, rows, gamma_f, beta_f, eps, tc, vmem_limit):
    N, C, L = x.shape
    assert C % tc == 0, "channel tile must divide C"
    itemsize = jnp.dtype(x.dtype).itemsize
    g = gamma_f.reshape(2, C, 1)
    b = beta_f.reshape(2, C, 1)
    kernel = functools.partial(_dual_bn_fused_kernel, eps=eps, inv_nl=1.0 / (N * L))
    return pl.pallas_call(
        kernel,
        out_shape=jax.ShapeDtypeStruct((N, C, L), x.dtype),
        grid_spec=pltpu.PrefetchScalarGridSpec(
            num_scalar_prefetch=0,
            grid=(C // tc,),
            in_specs=[
                pl.BlockSpec((N, tc, L), lambda i: (0, i, 0)),   # x channel tile
                pl.BlockSpec((N, 4), lambda i: (0, 0)),          # packed per-row data
                pl.BlockSpec((2, tc, 1), lambda i: (0, i, 0)),   # gamma tile
                pl.BlockSpec((2, tc, 1), lambda i: (0, i, 0)),   # beta tile
            ],
            out_specs=pl.BlockSpec((N, tc, L), lambda i: (0, i, 0)),
        ),
        compiler_params=pltpu.CompilerParams(
            dimension_semantics=("parallel",),
            vmem_limit_bytes=int(vmem_limit),
        ),
        cost_estimate=pl.CostEstimate(
            flops=7 * N * C * L,
            transcendentals=2 * C,
            bytes_accessed=2 * N * C * L * itemsize),
    )(x, rows, g, b)


def _split_call(x, rows, gamma_f, beta_f, eps, vmem_limit, budget, tiles=None):
    N, C, L = x.shape
    itemsize = jnp.dtype(x.dtype).itemsize
    if tiles is None:
        tc, tl = _pick_split_tiles(N, C, L, itemsize, budget)
    else:
        tc, tl = tiles
    assert C % tc == 0 and L % tl == 0, "split tiles must divide C and L"

    # ---- pass 1: per-channel, per-domain sums accumulated over L chunks ------
    stats = pl.pallas_call(
        _stats_kernel,
        out_shape=jax.ShapeDtypeStruct((C, 4), jnp.float32),
        grid_spec=pltpu.PrefetchScalarGridSpec(
            num_scalar_prefetch=0,
            grid=(C // tc, L // tl),
            in_specs=[
                pl.BlockSpec((N, tc, tl), lambda i, l: (0, i, l)),
                pl.BlockSpec((N, 4), lambda i, l: (0, 0)),
            ],
            out_specs=pl.BlockSpec((tc, 4), lambda i, l: (i, 0)),
        ),
        compiler_params=pltpu.CompilerParams(
            dimension_semantics=("parallel", "arbitrary"),
            vmem_limit_bytes=int(vmem_limit),
        ),
        cost_estimate=pl.CostEstimate(
            flops=4 * N * C * L, transcendentals=0,
            bytes_accessed=N * C * L * itemsize),
    )(x, rows)

    # Tiny per-channel scale/bias math stays in plain JAX (C elements).
    m0, e0, m1, e1 = stats[:, 0], stats[:, 1], stats[:, 2], stats[:, 3]
    var0 = jnp.maximum(e0 - m0 * m0, 0.0)
    var1 = jnp.maximum(e1 - m1 * m1, 0.0)
    s0 = jax.lax.rsqrt(var0 + eps) * gamma_f[0]
    s1 = jax.lax.rsqrt(var1 + eps) * gamma_f[1]
    b0 = beta_f[0] - m0 * s0
    b1 = beta_f[1] - m1 * s1
    sb = jnp.stack([s0, b0, s1, b1], axis=1)               # (C, 4)

    # ---- pass 2: fused normalize ---------------------------------------------
    return pl.pallas_call(
        _norm_kernel,
        out_shape=jax.ShapeDtypeStruct((N, C, L), x.dtype),
        grid_spec=pltpu.PrefetchScalarGridSpec(
            num_scalar_prefetch=0,
            grid=(C // tc, L // tl),
            in_specs=[
                pl.BlockSpec((N, tc, tl), lambda i, l: (0, i, l)),
                pl.BlockSpec((N, 4), lambda i, l: (0, 0)),
                pl.BlockSpec((tc, 4), lambda i, l: (i, 0)),
            ],
            out_specs=pl.BlockSpec((N, tc, tl), lambda i, l: (0, i, l)),
        ),
        compiler_params=pltpu.CompilerParams(
            dimension_semantics=("parallel", "parallel"),
            vmem_limit_bytes=int(vmem_limit),
        ),
        cost_estimate=pl.CostEstimate(
            flops=2 * N * C * L, transcendentals=0,
            bytes_accessed=2 * N * C * L * itemsize),
    )(x, rows, sb)


def my_batchnorm1d(x, is_tof, is_swi, gamma, beta, *, eps=EPS, tc=None,
                   force_split=False, split_tiles=None):
    """x: (N, C, L); is_tof/is_swi: (N,) bool; gamma/beta: (2, C).

    Output dtype follows x.dtype (bf16 x halves HBM traffic; stats are f32).
    """
    N, C, L = x.shape
    itemsize = jnp.dtype(x.dtype).itemsize
    vmem_limit, budget = _vmem_budget()

    f32 = jnp.float32
    tof_f = is_tof.astype(f32)
    swi_f = is_swi.astype(f32)
    # Domain element counts are channel-independent -> fold 1/(cnt*L) into
    # per-row weights; precompute the select coefficients (swi wins on overlap,
    # rows in neither domain get scale=bias=0 -> output 0).
    inv_cnt_tof = 1.0 / jnp.maximum(jnp.sum(tof_f) * L, 1.0)
    inv_cnt_swi = 1.0 / jnp.maximum(jnp.sum(swi_f) * L, 1.0)
    rows = jnp.stack([tof_f * inv_cnt_tof,          # w_tof
                      swi_f * inv_cnt_swi,          # w_swi
                      tof_f * (1.0 - swi_f),        # c_tof (tof and not swi)
                      swi_f],                       # c_swi
                     axis=1)                        # (N, 4)
    gamma_f = gamma.astype(f32)
    beta_f = beta.astype(f32)

    if force_split:
        return _split_call(x, rows, gamma_f, beta_f, eps, vmem_limit, budget,
                           tiles=split_tiles)
    if tc is None:
        tc = _pick_tc(N, C, L, itemsize, budget)
    if tc is not None:
        return _fused_call(x, rows, gamma_f, beta_f, eps, tc, vmem_limit)
    # Full-L channel tiles do not fit VMEM (large N*L): two-pass path.
    return _split_call(x, rows, gamma_f, beta_f, eps, vmem_limit, budget,
                       tiles=split_tiles)


# --------------------------------------------------------------------------- #
# Pure-JAX reference mirroring PyTorch semantics (training-mode batch stats).  #
# --------------------------------------------------------------------------- #
def _reference(x, is_tof, is_swi, gamma, beta, eps=EPS):
    N, C, L = x.shape

    def bn(mask, g, b):
        m = mask.astype(x.dtype)[:, None, None]
        cnt = jnp.maximum(jnp.sum(m) * L, 1.0)
        mean = jnp.sum(x * m, axis=(0, 2), keepdims=True) / cnt
        var = jnp.sum(((x - mean) ** 2) * m, axis=(0, 2), keepdims=True) / cnt
        return (x - mean) / jnp.sqrt(var + eps) * g[None, :, None] + b[None, :, None]

    y0 = bn(is_tof, gamma[0], beta[0])
    y1 = bn(is_swi, gamma[1], beta[1])
    out = jnp.zeros_like(x)
    out = jnp.where(is_tof[:, None, None], y0, out)
    out = jnp.where(is_swi[:, None, None], y1, out)
    return out


if __name__ == "__main__":
    key = jax.random.PRNGKey(0)
    N, C, L = 6, 32, 256
    kx, k1, k2 = jax.random.split(key, 3)
    x = jax.random.normal(kx, (N, C, L), dtype=jnp.float32)

    # rows 0-2 -> tof, rows 3-4 -> swi, row 5 -> neither (stays zero)
    is_tof = jnp.array([True, True, True, False, False, False])
    is_swi = jnp.array([False, False, False, True, True, False])
    gamma = jnp.ones((2, C), dtype=jnp.float32)   # PyTorch default affine init
    beta = jnp.zeros((2, C), dtype=jnp.float32)

    out = jax.block_until_ready(my_batchnorm1d(x, is_tof, is_swi, gamma, beta))
    ref = _reference(x, is_tof, is_swi, gamma, beta)
    assert out.shape == (N, C, L) and out.dtype == jnp.float32
    assert jnp.allclose(out, ref, atol=1e-5, rtol=1e-5), "mismatch (case 1)"

    # Case 2: non-trivial affine, overlap row (swi wins), multi-step grid (tc=8).
    gamma2 = jax.random.normal(k1, (2, C), dtype=jnp.float32)
    beta2 = jax.random.normal(k2, (2, C), dtype=jnp.float32)
    is_tof2 = jnp.array([True, True, True, False, True, False])
    is_swi2 = jnp.array([False, False, True, True, True, False])
    out2 = jax.block_until_ready(
        my_batchnorm1d(x, is_tof2, is_swi2, gamma2, beta2, tc=8))
    ref2 = _reference(x, is_tof2, is_swi2, gamma2, beta2)
    assert jnp.allclose(out2, ref2, atol=1e-5, rtol=1e-5), "mismatch (case 2)"

    # Case 3: force the two-pass (stats + normalize) path used when a full-L
    # tile would not fit VMEM; tiles chosen so the L axis is really accumulated.
    out3 = jax.block_until_ready(
        my_batchnorm1d(x, is_tof2, is_swi2, gamma2, beta2,
                       force_split=True, split_tiles=(8, 128)))
    assert jnp.allclose(out3, ref2, atol=1e-5, rtol=1e-5), "mismatch (case 3)"

    # Case 4: bf16 I/O (halves HBM traffic); stats still accumulate in f32.
    x_bf = x.astype(jnp.bfloat16)
    out4 = jax.block_until_ready(my_batchnorm1d(x_bf, is_tof2, is_swi2, gamma2, beta2))
    ref4 = _reference(x_bf.astype(jnp.float32), is_tof2, is_swi2, gamma2, beta2)
    assert out4.dtype == jnp.bfloat16
    assert jnp.allclose(out4.astype(jnp.float32), ref4, atol=5e-2, rtol=5e-2), \
        "mismatch (case 4, bf16)"

    print("KERNEL_OK")
</pallas_src>

<mosaic_0001>
module attributes {stable_mosaic.version = 11 : i64} {
  func.func @_dual_bn_fused_kernel(%arg0: i32, %arg1: memref<6x32x256xf32, #tpu.memory_space<vmem>>, %arg2: memref<6x4xf32, #tpu.memory_space<vmem>>, %arg3: memref<2x32x1xf32, #tpu.memory_space<vmem>>, %arg4: memref<2x32x1xf32, #tpu.memory_space<vmem>>, %arg5: memref<6x32x256xf32, #tpu.memory_space<vmem>>) attributes {dimension_semantics = [#tpu.dimension_semantics<parallel>], iteration_bounds = array<i64: 1>, scalar_prefetch = 0 : i64, scratch_operands = 0 : i64, tpu.core_type = #tpu.core_type<tc>, window_params = [{transform_indices = @transform_0, window_bounds = array<i64: 6, 32, 256>}, {pipeline_mode = #tpu.pipeline_mode<synchronous>, transform_indices = @transform_1, window_bounds = array<i64: 6, 4>}, {transform_indices = @transform_2, window_bounds = array<i64: 2, 32, 1>}, {transform_indices = @transform_3, window_bounds = array<i64: 2, 32, 1>}, {transform_indices = @transform_4, window_bounds = array<i64: 6, 32, 256>}]} {
    %c0 = arith.constant 0 : index
    %c0_0 = arith.constant 0 : index
    %c0_1 = arith.constant 0 : index
    %0 = vector.load %arg1[%c0, %c0_0, %c0_1] : memref<6x32x256xf32, #tpu.memory_space<vmem>>, vector<6x32x256xf32>
    %cst = arith.constant dense<0.000000e+00> : vector<6x32xf32>
    %1 = vector.multi_reduction <add>, %0, %cst [2] : vector<6x32x256xf32> to vector<6x32xf32>
    %2 = vector.shape_cast %1 : vector<6x32xf32> to vector<6x32x1xf32>
    %cst_2 = arith.constant dense<0.000000e+00> : vector<32x1xf32>
    %3 = vector.multi_reduction <add>, %2, %cst_2 [0] : vector<6x32x1xf32> to vector<32x1xf32>
    %4 = vector.shape_cast %3 : vector<32x1xf32> to vector<1x32x1xf32>
    %cst_3 = arith.constant 6.51041686E-4 : f32
    %5 = vector.broadcast %cst_3 : f32 to vector<1x32x1xf32>
    %6 = arith.mulf %4, %5 : vector<1x32x1xf32>
    %7 = vector.broadcast %6 : vector<1x32x1xf32> to vector<6x32x256xf32>
    %8 = arith.subf %0, %7 : vector<6x32x256xf32>
    %9 = arith.mulf %8, %8 : vector<6x32x256xf32>
    %cst_4 = arith.constant dense<0.000000e+00> : vector<6x32xf32>
    %10 = vector.multi_reduction <add>, %9, %cst_4 [2] : vector<6x32x256xf32> to vector<6x32xf32>
    %11 = vector.shape_cast %10 : vector<6x32xf32> to vector<6x32x1xf32>
    %cst_5 = arith.constant 2.560000e+02 : f32
    %12 = vector.broadcast %cst_5 : f32 to vector<1x32x1xf32>
    %13 = arith.mulf %12, %6 : vector<1x32x1xf32>
    %14 = vector.broadcast %13 : vector<1x32x1xf32> to vector<6x32x1xf32>
    %15 = arith.subf %2, %14 : vector<6x32x1xf32>
    %c0_6 = arith.constant 0 : index
    %c0_7 = arith.constant 0 : index
    %16 = vector.load %arg2[%c0_6, %c0_7] : memref<6x4xf32, #tpu.memory_space<vmem>>, vector<6x4xf32>
    %17 = vector.extract_strided_slice %16 {offsets = [0, 0], sizes = [6, 1], strides = [1, 1]} : vector<6x4xf32> to vector<6x1xf32>
    %18 = vector.shape_cast %17 : vector<6x1xf32> to vector<6x1x1xf32>
    %19 = vector.extract_strided_slice %16 {offsets = [0, 1], sizes = [6, 1], strides = [1, 1]} : vector<6x4xf32> to vector<6x1xf32>
    %20 = vector.shape_cast %19 : vector<6x1xf32> to vector<6x1x1xf32>
    %21 = vector.extract_strided_slice %16 {offsets = [0, 2], sizes = [6, 1], strides = [1, 1]} : vector<6x4xf32> to vector<6x1xf32>
    %22 = vector.shape_cast %21 : vector<6x1xf32> to vector<6x1x1xf32>
    %23 = vector.extract_strided_slice %16 {offsets = [0, 3], sizes = [6, 1], strides = [1, 1]} : vector<6x4xf32> to vector<6x1xf32>
    %24 = vector.shape_cast %23 : vector<6x1xf32> to vector<6x1x1xf32>
    %25 = vector.broadcast %18 : vector<6x1x1xf32> to vector<6x32x1xf32>
    %26 = arith.mulf %15, %25 : vector<6x32x1xf32>
    %cst_8 = arith.constant dense<0.000000e+00> : vector<32x1xf32>
    %27 = vector.multi_reduction <add>, %26, %cst_8 [0] : vector<6x32x1xf32> to vector<32x1xf32>
    %28 = vector.shape_cast %27 : vector<32x1xf32> to vector<1x32x1xf32>
    %29 = vector.broadcast %18 : vector<6x1x1xf32> to vector<6x32x1xf32>
    %30 = arith.mulf %11, %29 : vector<6x32x1xf32>
    %cst_9 = arith.constant dense<0.000000e+00> : vector<32x1xf32>
    %31 = vector.multi_reduction <add>, %30, %cst_9 [0] : vector<6x32x1xf32> to vector<32x1xf32>
    %32 = vector.shape_cast %31 : vector<32x1xf32> to vector<1x32x1xf32>
    %33 = vector.broadcast %20 : vector<6x1x1xf32> to vector<6x32x1xf32>
    %34 = arith.mulf %15, %33 : vector<6x32x1xf32>
    %cst_10 = arith.constant dense<0.000000e+00> : vector<32x1xf32>
    %35 = vector.multi_reduction <add>, %34, %cst_10 [0] : vector<6x32x1xf32> to vector<32x1xf32>
    %36 = vector.shape_cast %35 : vector<32x1xf32> to vector<1x32x1xf32>
    %37 = vector.broadcast %20 : vector<6x1x1xf32> to vector<6x32x1xf32>
    %38 = arith.mulf %11, %37 : vector<6x32x1xf32>
    %cst_11 = arith.constant dense<0.000000e+00> : vector<32x1xf32>
    %39 = vector.multi_reduction <add>, %38, %cst_11 [0] : vector<6x32x1xf32> to vector<32x1xf32>
    %40 = vector.shape_cast %39 : vector<32x1xf32> to vector<1x32x1xf32>
    %41 = arith.mulf %28, %28 : vector<1x32x1xf32>
    %42 = arith.subf %32, %41 : vector<1x32x1xf32>
    %cst_12 = arith.constant 0.000000e+00 : f32
    %43 = vector.broadcast %cst_12 : f32 to vector<1x32x1xf32>
    %44 = arith.maximumf %42, %43 : vector<1x32x1xf32>
    %45 = arith.mulf %36, %36 : vector<1x32x1xf32>
    %46 = arith.subf %40, %45 : vector<1x32x1xf32>
    %cst_13 = arith.constant 0.000000e+00 : f32
    %47 = vector.broadcast %cst_13 : f32 to vector<1x32x1xf32>
    %48 = arith.maximumf %46, %47 : vector<1x32x1xf32>
    %c0_14 = arith.constant 0 : index
    %c0_15 = arith.constant 0 : index
    %c0_16 = arith.constant 0 : index
    %49 = vector.load %arg3[%c0_14, %c0_15, %c0_16] : memref<2x32x1xf32, #tpu.memory_space<vmem>>, vector<2x32x1xf32>
    %c0_17 = arith.constant 0 : index
    %c0_18 = arith.constant 0 : index
    %c0_19 = arith.constant 0 : index
    %50 = vector.load %arg4[%c0_17, %c0_18, %c0_19] : memref<2x32x1xf32, #tpu.memory_space<vmem>>, vector<2x32x1xf32>
    %cst_20 = arith.constant 9.99999974E-6 : f32
    %51 = vector.broadcast %cst_20 : f32 to vector<1x32x1xf32>
    %52 = arith.addf %44, %51 : vector<1x32x1xf32>
    %53 = math.rsqrt %52 : vector<1x32x1xf32>
    %54 = vector.extract_strided_slice %49 {offsets = [0, 0, 0], sizes = [1, 32, 1], strides = [1, 1, 1]} : vector<2x32x1xf32> to vector<1x32x1xf32>
    %55 = arith.mulf %53, %54 : vector<1x32x1xf32>
    %cst_21 = arith.constant 9.99999974E-6 : f32
    %56 = vector.broadcast %cst_21 : f32 to vector<1x32x1xf32>
    %57 = arith.addf %48, %56 : vector<1x32x1xf32>
    %58 = math.rsqrt %57 : vector<1x32x1xf32>
    %59 = vector.extract_strided_slice %49 {offsets = [1, 0, 0], sizes = [1, 32, 1], strides = [1, 1, 1]} : vector<2x32x1xf32> to vector<1x32x1xf32>
    %60 = arith.mulf %58, %59 : vector<1x32x1xf32>
    %61 = vector.extract_strided_slice %50 {offsets = [0, 0, 0], sizes = [1, 32, 1], strides = [1, 1, 1]} : vector<2x32x1xf32> to vector<1x32x1xf32>
    %62 = arith.addf %6, %28 : vector<1x32x1xf32>
    %63 = arith.mulf %62, %55 : vector<1x32x1xf32>
    %64 = arith.subf %61, %63 : vector<1x32x1xf32>
    %65 = vector.extract_strided_slice %50 {offsets = [1, 0, 0], sizes = [1, 32, 1], strides = [1, 1, 1]} : vector<2x32x1xf32> to vector<1x32x1xf32>
    %66 = arith.addf %6, %36 : vector<1x32x1xf32>
    %67 = arith.mulf %66, %60 : vector<1x32x1xf32>
    %68 = arith.subf %65, %67 : vector<1x32x1xf32>
    %69 = vector.broadcast %22 : vector<6x1x1xf32> to vector<6x32x1xf32>
    %70 = vector.broadcast %55 : vector<1x32x1xf32> to vector<6x32x1xf32>
    %71 = arith.mulf %69, %70 : vector<6x32x1xf32>
    %72 = vector.broadcast %24 : vector<6x1x1xf32> to vector<6x32x1xf32>
    %73 = vector.broadcast %60 : vector<1x32x1xf32> to vector<6x32x1xf32>
    %74 = arith.mulf %72, %73 : vector<6x32x1xf32>
    %75 = arith.addf %71, %74 : vector<6x32x1xf32>
    %76 = vector.broadcast %22 : vector<6x1x1xf32> to vector<6x32x1xf32>
    %77 = vector.broadcast %64 : vector<1x32x1xf32> to vector<6x32x1xf32>
    %78 = arith.mulf %76, %77 : vector<6x32x1xf32>
    %79 = vector.broadcast %24 : vector<6x1x1xf32> to vector<6x32x1xf32>
    %80 = vector.broadcast %68 : vector<1x32x1xf32> to vector<6x32x1xf32>
    %81 = arith.mulf %79, %80 : vector<6x32x1xf32>
    %82 = arith.addf %78, %81 : vector<6x32x1xf32>
    %c0_22 = arith.constant 0 : index
    %c0_23 = arith.constant 0 : index
    %c0_24 = arith.constant 0 : index
    %83 = vector.load %arg1[%c0_22, %c0_23, %c0_24] : memref<6x32x256xf32, #tpu.memory_space<vmem>>, vector<6x32x256xf32>
    %84 = vector.broadcast %75 : vector<6x32x1xf32> to vector<6x32x256xf32>
    %85 = arith.mulf %83, %84 : vector<6x32x256xf32>
    %86 = vector.broadcast %82 : vector<6x32x1xf32> to vector<6x32x256xf32>
    %87 = arith.addf %85, %86 : vector<6x32x256xf32>
    %c0_25 = arith.constant 0 : index
    %c0_26 = arith.constant 0 : index
    %c0_27 = arith.constant 0 : index
    %88 = vector.load %arg5[%c0_25, %c0_26, %c0_27] : memref<6x32x256xf32, #tpu.memory_space<vmem>>, vector<6x32x256xf32>
    tpu.vector_store %arg5[%c0_25, %c0_26, %c0_27], %87 {strides = array<i32>} : memref<6x32x256xf32, #tpu.memory_space<vmem>>, vector<6x32x256xf32>,
    return
  }
  func.func @transform_0(%arg0: i32) -> (i32, i32, i32) {
    %c0_i32 = arith.constant 0 : i32
    %c0_i32_0 = arith.constant 0 : i32
    %c0_i32_1 = arith.constant 0 : i32
    return %c0_i32, %arg0, %c0_i32_0 : i32, i32, i32
  }
  func.func @transform_1(%arg0: i32) -> (i32, i32) {
    %c0_i32 = arith.constant 0 : i32
    %c0_i32_0 = arith.constant 0 : i32
    %c0_i32_1 = arith.constant 0 : i32
    return %c0_i32, %c0_i32_0 : i32, i32
  }
  func.func @transform_2(%arg0: i32) -> (i32, i32, i32) {
    %c0_i32 = arith.constant 0 : i32
    %c0_i32_0 = arith.constant 0 : i32
    %c0_i32_1 = arith.constant 0 : i32
    return %c0_i32, %arg0, %c0_i32_0 : i32, i32, i32
  }
  func.func @transform_3(%arg0: i32) -> (i32, i32, i32) {
    %c0_i32 = arith.constant 0 : i32
    %c0_i32_0 = arith.constant 0 : i32
    %c0_i32_1 = arith.constant 0 : i32
    return %c0_i32, %arg0, %c0_i32_0 : i32, i32, i32
  }
  func.func @transform_4(%arg0: i32) -> (i32, i32, i32) {
    %c0_i32 = arith.constant 0 : i32
    %c0_i32_0 = arith.constant 0 : i32
    %c0_i32_1 = arith.constant 0 : i32
    return %c0_i32, %arg0, %c0_i32_0 : i32, i32, i32
  }
}

</mosaic_0001>

<bundles_post_ra>
// kernel: tpu_custom_call.1
= control target key start
LH: loop header
LB: loop body
LE: loop exit
PB: predicated region body
PF: predicated region fallthrough
CT: control target
= control target key end

     0   :  { %9 = vsyncpa [#allocation3], 0  ;;  %s2873_s0 = inlined_call_operand.hbm [shape: f32[6,32,256], index: 0, kind: input, shape index: {}]   ;;  %s2874_s1 = inlined_call_operand.vmem [shape: f32[6,4], index: 1, kind: input, shape index: {}]   ;;  %s2875_s2 = inlined_call_operand.vmem [shape: f32[2,32,1], index: 2, kind: input, shape index: {}]   ;;  %s2876_s3 = inlined_call_operand.vmem [shape: f32[2,32,1], index: 3, kind: input, shape index: {}]   ;;  %s2877_s4 = inlined_call_operand.hbm [shape: f32[6,32,256], index: 4, kind: output, shape index: {}]  }
   0x1   :  { %10 = vsyncpa [#allocation4], 0  ;;  %s15_s17 = sshll.u32 %s2873_s0, 4  ;;  %s1742_s18 = smov [#allocation2]   ;;  %s16_s17 = int_to_ptr.hbm [resolvable:$true] %s15_s17 }
   0x2   :  { %s17_s19 = sshll.u32 %s1742_s18, 4  ;;  %s1743_s20 = smov 256   ;;  %s18_s19 = int_to_ptr.vmem [resolvable:$true] %s17_s19 }
   0x3   :  { %s1744_s21 = smov 16  }
   0x4   :  { %23 = dma.hbm_to_vmem [thread:$0]  %s16_s17, 6144, %s18_s19, [#allocation3], %s1743_s20, %s1743_s20, %s1744_s21  }
   0x5   :  { %1738 = dma.done.wait [#allocation3], 6144  }
   0x6   :  { %1739 = vsyncadd [#allocation3], 4294961152  ;;  %v1782_v0 = vld [vmem:[#allocation2 + $0x40] sm:$0xff]  ;;  %v1784_v1 = vld [vmem:[#allocation2 + $0x48] sm:$0xff]  ;;  %s1745_s23 = smov 1   ;;  %vm417_vm0 = vcmask 7168  }
   0x7   :  { %v1786_v2 = vld [vmem:[#allocation2 + $0x20] sm:$0xff]  ;;  %v94_v3 = vadd.f32 %v1784_v1, %v1782_v0  ;;  %v1790_v4 = vld [vmem:[#allocation2 + $0x28] sm:$0xff]  ;;  %v1800_v9 = vld [vmem:[#allocation2 + $0x50] sm:$0xff]  ;;  %vm530_vm1 = vcmask 15368   ;;  %s1746_s9 = smov 2   ;;  %s1747_s12 = smov 127  }
   0x8   :  { %v1792_v5 = vld [vmem:[#allocation2] sm:$0xff]  ;;  %v1794_v6 = vld [vmem:[#allocation2 + $0x8] sm:$0xff]  ;;  %v88_v7 = vadd.f32 %v1790_v4, %v1786_v2  ;;  %v1802_v10 = vld [vmem:[#allocation2 + $0x58] sm:$0xff]  ;;  %s1749_s25 = smov 3   ;;  %s1601_s8 = sshll.u32 %s2877_s4, 4  ;;  %s1602_s8 = int_to_ptr.hbm [resolvable:$true] %s1601_s8 }
   0x9   :  { %v82_v8 = vadd.f32 %v1794_v6, %v1792_v5  ;;  %95 = vadd.xlane.f32.xlu2 %v94_v3  ;;  %v1804_v11 = vld [vmem:[#allocation2 + $0x30] sm:$0xff]  ;;  %v1806_v12 = vld [vmem:[#allocation2 + $0x38] sm:$0xff]  ;;  %v97_v15 = vadd.f32 %v1802_v10, %v1800_v9  ;;  %v1818_v18 = vld [vmem:[#allocation2 + $0x80] sm:$0xff] }
   0xa   :  { %89 = vadd.xlane.f32.xlu1 %v88_v7  ;;  %v1808_v13 = vld [vmem:[#allocation2 + $0x10] sm:$0xff]  ;;  %v1810_v14 = vld [vmem:[#allocation2 + $0x18] sm:$0xff]  ;;  %v91_v16 = vadd.f32 %v1806_v12, %v1804_v11  ;;  %v1820_v19 = vld [vmem:[#allocation2 + $0x88] sm:$0xff] }
   0xb   :  { %83 = vadd.xlane.f32.xlu0 %v82_v8  ;;  %v85_v17 = vadd.f32 %v1810_v14, %v1808_v13  ;;  %v1822_v20 = vld [vmem:[#allocation2 + $0x70] sm:$0xff]  ;;  %v1824_v21 = vld [vmem:[#allocation2 + $0x78] sm:$0xff]  ;;  %v1826_v22 = vld [vmem:[#allocation2 + $0x60] sm:$0xff]  ;;  %v106_v24 = vadd.f32 %v1820_v19, %v1818_v18 }
   0xc   :  { %v1828_v23 = vld [vmem:[#allocation2 + $0x68] sm:$0xff]  ;;  %v103_v25 = vadd.f32 %v1824_v21, %v1822_v20  ;;  %v1836_v27 = vld [vmem:[#allocation2 + $0xb0] sm:$0xff]  ;;  %v1838_v28 = vld [vmem:[#allocation2 + $0xb8] sm:$0xff] }
   0xd   :  { %v100_v26 = vadd.f32 %v1828_v23, %v1826_v22  ;;  %v1840_v29 = vld [vmem:[#allocation2 + $0xa0] sm:$0xff]  ;;  %v1842_v30 = vld [vmem:[#allocation2 + $0xa8] sm:$0xff]  ;;  %v1844_v31 = vld [vmem:[#allocation2 + $0x90] sm:$0xff]  ;;  %v115_v33 = vadd.f32 %v1838_v28, %v1836_v27 }
   0xe   :  { %v1846_v32 = vld [vmem:[#allocation2 + $0x98] sm:$0xff]  ;;  %v112_v34 = vadd.f32 %v1842_v30, %v1840_v29  ;;  %v1854_v36 = vld [vmem:[#allocation2 + $0xe0] sm:$0xff]  ;;  %v1856_v37 = vld [vmem:[#allocation2 + $0xe8] sm:$0xff] }
   0xf   :  { %v109_v35 = vadd.f32 %v1846_v32, %v1844_v31  ;;  %v1858_v38 = vld [vmem:[#allocation2 + $0xd0] sm:$0xff]  ;;  %v1860_v39 = vld [vmem:[#allocation2 + $0xd8] sm:$0xff]  ;;  %v1862_v40 = vld [vmem:[#allocation2 + $0xc0] sm:$0xff]  ;;  %v124_v42 = vadd.f32 %v1856_v37, %v1854_v36 }
  0x10   :  { %v1864_v41 = vld [vmem:[#allocation2 + $0xc8] sm:$0xff]  ;;  %v121_v43 = vadd.f32 %v1860_v39, %v1858_v38  ;;  %v1872_v45 = vld [vmem:[#allocation2 + $0x110] sm:$0xff]  ;;  %v1874_v46 = vld [vmem:[#allocation2 + $0x118] sm:$0xff] }
  0x11   :  { %98 = vadd.xlane.f32.xlu2 %v97_v15  ;;  %v118_v44 = vadd.f32 %v1864_v41, %v1862_v40  ;;  %2905 = vst [vmem:[#allocation8_spill] sm:$0xff] %v1872_v45  ;;  %v1876_v47 = vld [vmem:[#allocation2 + $0x100] sm:$0xff]  ;;  %v1878_v48 = vld [vmem:[#allocation2 + $0x108] sm:$0xff]  ;;  %v1880_v49 = vld [vmem:[#allocation2 + $0xf0] sm:$0xff]  ;;  %v133_v51 = vadd.f32 %v1874_v46, %v1872_v45 }
  0x12   :  { %92 = vadd.xlane.f32.xlu1 %v91_v16  ;;  %2906 = vst [vmem:[#allocation9_spill] sm:$0xff] %v1874_v46  ;;  %v1882_v50 = vld [vmem:[#allocation2 + $0xf8] sm:$0xff]  ;;  %v130_v52 = vadd.f32 %v1878_v48, %v1876_v47  ;;  %v1890_v54 = vld [vmem:[#allocation2 + $0x140] sm:$0xff]  ;;  %v1892_v55 = vld [vmem:[#allocation2 + $0x148] sm:$0xff] }
  0x13   :  { %86 = vadd.xlane.f32.xlu0 %v85_v17  ;;  %2907 = vst [vmem:[#allocation10_spill] sm:$0xff] %v1876_v47  ;;  %v127_v53 = vadd.f32 %v1882_v50, %v1880_v49  ;;  %v1894_v56 = vld [vmem:[#allocation2 + $0x130] sm:$0xff]  ;;  %v1896_v57 = vld [vmem:[#allocation2 + $0x138] sm:$0xff]  ;;  %v1898_v58 = vld [vmem:[#allocation2 + $0x120] sm:$0xff]  ;;  %v142_v60 = vadd.f32 %v1892_v55, %v1890_v54 }
  0x14   :  { %2908 = vst [vmem:[#allocation11_spill] sm:$0xff] %v1878_v48  ;;  %v1900_v59 = vld [vmem:[#allocation2 + $0x128] sm:$0xff]  ;;  %v139_v61 = vadd.f32 %v1896_v57, %v1894_v56  ;;  %v1908_v63 = vld [vmem:[#allocation2 + $0x170] sm:$0xff]  ;;  %v1910_v3 = vld [vmem:[#allocation2 + $0x178] sm:$0xff] }
  0x15   :  { %2909 = vst [vmem:[#allocation12_spill] sm:$0xff] %v1890_v54  ;;  %v136_v62 = vadd.f32 %v1900_v59, %v1898_v58  ;;  %v1912_v7 = vld [vmem:[#allocation2 + $0x160] sm:$0xff]  ;;  %v1914_v8 = vld [vmem:[#allocation2 + $0x168] sm:$0xff]  ;;  %v1916_v15 = vld [vmem:[#allocation2 + $0x150] sm:$0xff]  ;;  %v151_v17 = vadd.f32 %v1910_v3, %v1908_v63 }
  0x16   :  { %2910 = vst [vmem:[#allocation13_spill] sm:$0xff] %v1892_v55  ;;  %v1918_v16 = vld [vmem:[#allocation2 + $0x158] sm:$0xff] }
  0x17   :  { %2911 = vst [vmem:[#allocation14_spill] sm:$0xff] %v1894_v56 }
  0x18   :  { %2912 = vst [vmem:[#allocation15_spill] sm:$0xff] %v1896_v57 }
  0x19   :  { %107 = vadd.xlane.f32.xlu2 %v106_v24  ;;  %2913 = vst [vmem:[#allocation16_spill] sm:$0xff] %v1900_v59  ;;  %v148_v24 = vadd.f32 %v1914_v8, %v1912_v7 }
  0x1a   :  { %104 = vadd.xlane.f32.xlu1 %v103_v25  ;;  %2914 = vst [vmem:[#allocation17_spill] sm:$0xff] %v1908_v63  ;;  %v145_v25 = vadd.f32 %v1918_v16, %v1916_v15 }
  0x1b   :  { %101 = vadd.xlane.f32.xlu0 %v100_v26  ;;  %2915 = vst [vmem:[#allocation18_spill] sm:$0xff] %v1910_v3  ;;  %v647_v26 = vld [vmem:[%s2875_s2 + $0x20] sm:$0xff] }
  0x1c   :  { %2916 = vst [vmem:[#allocation19_spill] sm:$0xff] %v1912_v7 }
  0x1d   :  { %2917 = vst [vmem:[#allocation20_spill] sm:$0xff] %v1914_v8 }
  0x1e   :  { %2918 = vst [vmem:[#allocation21_spill] sm:$0xff] %v1916_v15 }
  0x1f   :  { %2919 = vst [vmem:[#allocation22_spill] sm:$0xff] %v1918_v16 }
  0x21   :  { %116 = vadd.xlane.f32.xlu2 %v115_v33 }
  0x22   :  { %113 = vadd.xlane.f32.xlu1 %v112_v34 }
  0x23   :  { %110 = vadd.xlane.f32.xlu0 %v109_v35 }
  0x29   :  { %125 = vadd.xlane.f32.xlu2 %v124_v42 }
  0x2a   :  { %122 = vadd.xlane.f32.xlu1 %v121_v43 }
  0x2b   :  { %119 = vadd.xlane.f32.xlu0 %v118_v44 }
  0x31   :  { %134 = vadd.xlane.f32.xlu2 %v133_v51 }
  0x32   :  { %131 = vadd.xlane.f32.xlu1 %v130_v52 }
  0x33   :  { %128 = vadd.xlane.f32.xlu0 %v127_v53 }
  0x39   :  { %143 = vadd.xlane.f32.xlu2 %v142_v60 }
  0x3a   :  { %140 = vadd.xlane.f32.xlu1 %v139_v61 }
  0x3b   :  { %137 = vadd.xlane.f32.xlu0 %v136_v62 }
  0x41   :  { %152 = vadd.xlane.f32.xlu2 %v151_v17 }
  0x42   :  { %149 = vadd.xlane.f32.xlu1 %v148_v24 }
  0x43   :  { %146 = vadd.xlane.f32.xlu0 %v145_v25 }
  0x57   :  { %755 = vrot.lane.b32.xlu0 %v647_v26, %s1745_s23 }
  0x7c   :  { %v1930_v33 = vpop.xlane.xlu2 %95 }
  0x7d   :  { %2920 = vst [vmem:[#allocation23_spill] sm:$0xff] %v1930_v33  ;;  %v1932_v34 = vpop.xlane.xlu1 %89 }
  0x7e   :  { %v1934_v35 = vpop.xlane.xlu0 %83 }
  0x7f   :  { %2921 = vst [vmem:[#allocation24_spill] sm:$0xff] %v1934_v35  ;;  %v154_v26 = vadd.f32 %v1930_v33, %v1934_v35 }
  0x84   :  { %v1936_v42 = vpop.xlane.xlu2 %98 }
  0x85   :  { %v1938_v43 = vpop.xlane.xlu1 %92 }
  0x86   :  { %2922 = vst [vmem:[#allocation25_spill] sm:$0xff] %v1938_v43  ;;  %v1940_v44 = vpop.xlane.xlu0 %86 }
  0x8c   :  { %v1942_v51 = vpop.xlane.xlu2 %107 }
  0x8d   :  { %2923 = vst [vmem:[#allocation26_spill] sm:$0xff] %v1942_v51  ;;  %v1944_v52 = vpop.xlane.xlu1 %104  ;;  %v155_v63 = vadd.f32 %v154_v26, %v1942_v51 }
  0x8e   :  { %2924 = vst [vmem:[#allocation27_spill] sm:$0xff] %v1944_v52  ;;  %v1946_v53 = vpop.xlane.xlu0 %101 }
  0x94   :  { %v1948_v60 = vpop.xlane.xlu2 %116 }
  0x95   :  { %2925 = vst [vmem:[#allocation28_spill] sm:$0xff] %v1948_v60  ;;  %v1950_v61 = vpop.xlane.xlu1 %113 }
  0x96   :  { %v1952_v62 = vpop.xlane.xlu0 %110 }
  0x9c   :  { %v1954_v17 = vpop.xlane.xlu2 %125 }
  0x9d   :  { %v1956_v24 = vpop.xlane.xlu1 %122 }
  0x9e   :  { %v1962_v3 = vpop.xlane.xlu0 %119 }
  0x9f   :  { %2926 = vst [vmem:[#allocation29_spill] sm:$0xff] %v1962_v3  ;;  %v156_v7 = vadd.f32 %v155_v63, %v1962_v3 }
  0xa4   :  { %v1958_v25 = vpop.xlane.xlu2 %134 }
  0xa5   :  { %v1965_v8 = vpop.xlane.xlu1 %131 }
  0xa6   :  { %2927 = vst [vmem:[#allocation30_spill] sm:$0xff] %v1965_v8  ;;  %v157_v57 = vadd.f32 %v156_v7, %v1965_v8  ;;  %v1978_v35 = vpop.xlane.xlu0 %128 }
  0xa7   :  { %2929 = vst [vmem:[#allocation32_spill] sm:$0xff] %v1978_v35 }
  0xac   :  { %v1969_v56 = vpop.xlane.xlu2 %143 }
  0xad   :  { %2928 = vst [vmem:[#allocation31_spill] sm:$0xff] %v1969_v56  ;;  %v158_v55 = vadd.f32 %v157_v57, %v1969_v56  ;;  %v1980_v63 = vpop.xlane.xlu1 %140  ;;  %v164_v57 = vadd.f32 %v1946_v53, %v1932_v34 }
  0xae   :  { %2930 = vst [vmem:[#allocation33_spill] sm:$0xff] %v1980_v63  ;;  %v1982_v7 = vpop.xlane.xlu0 %137 }
  0xaf   :  { %v1972_v54 = vmul.f32 0.0006510417, %v158_v55  ;;  %v169_v55 = vadd.f32 %v1944_v52, %v1938_v43 }
  0xb1   :  { %v178_v16 = vsub.f32 %v1792_v5, %v1972_v54  ;;  %v179_v33 = vsub.f32 %v1794_v6, %v1972_v54  ;;  %v170_v5 = vadd.f32 %v169_v55, %v1948_v60  ;;  %v159_v6 = vadd.f32 %v1936_v42, %v1940_v44 }
  0xb3   :  { %v226_v26 = vmul.f32 %v178_v16, %v178_v16  ;;  %v227_v51 = vmul.f32 %v179_v33, %v179_v33  ;;  %v165_v16 = vadd.f32 %v164_v57, %v1950_v61  ;;  %v171_v33 = vadd.f32 %v170_v5, %v1978_v35 }
  0xb5   :  { %v274_v15 = vadd.f32 %v227_v51, %v226_v26  ;;  %v160_v51 = vadd.f32 %v159_v6, %v1952_v62  ;;  %v1995_v26 = vpop.xlane.xlu2 %152  ;;  %v172_v52 = vadd.f32 %v171_v33, %v1980_v63  ;;  %v1998_v43 = vpop.xlane.xlu1 %149  ;;  %v374_v33 = vld [vmem:[%s2874_s1] sm:$0x3f] }
  0xb6   :  { %2931 = vst [vmem:[#allocation34_spill] sm:$0xff] %v1995_v26  ;;  %v2003_v8 = vpop.xlane.xlu0 %146 }
  0xb7   :  { %275 = vadd.xlane.f32.xlu0 %v274_v15  ;;  %v166_v15 = vadd.f32 %v165_v16, %v1954_v17  ;;  %v161_v56 = vadd.f32 %v160_v51, %v1956_v24  ;;  %v173_v60 = vadd.f32 %v172_v52, %v1995_v26  ;;  %v380_v26 = vrot.slane %v374_v33, 5 }
  0xb9   :  { %v167_v55 = vadd.f32 %v166_v15, %v1982_v7  ;;  %v162_v57 = vadd.f32 %v161_v56, %v1958_v25  ;;  %v2008_v16 = vmul.f32 0.0006510417, %v173_v60  ;;  %v376_v15 = vrot.slane %v374_v33, 1 }
  0xba   :  { %v377_v60 = vrot.slane %v374_v33, 2 }
  0xbb   :  { %v168_v5 = vadd.f32 %v167_v55, %v1998_v43  ;;  %v163_v6 = vadd.f32 %v162_v57, %v2003_v8  ;;  %v184_v52 = vsub.f32 %v1804_v11, %v2008_v16  ;;  %v185_v56 = vsub.f32 %v1806_v12, %v2008_v16 }
  0xbc   :  { %v378_v57 = vrot.slane %v374_v33, 3  ;;  %v2031_v12 = vperm.slane %v374_v33, 0  ;;  %v2033_v47 = vperm.slane %v376_v15, 0  ;;  %v2037_v45 = vperm.slane %v377_v60, 0 }
  0xbd   :  { %v2010_v35 = vmul.f32 0.0006510417, %v168_v5  ;;  %v2015_v51 = vmul.f32 0.0006510417, %v163_v6  ;;  %v379_v5 = vrot.slane %v374_v33, 4  ;;  %v232_v3 = vmul.f32 %v184_v52, %v184_v52 }
  0xbe   :  { %v233_v6 = vmul.f32 %v185_v56, %v185_v56  ;;  %v2039_v59 = vperm.slane %v378_v57, 0  ;;  %v2043_v56 = vperm.slane %v380_v26, 0 }
  0xbf   :  { %v2022_v55 = vmul.f32 256.0, %v2010_v35  ;;  %v2025_v63 = vmul.f32 256.0, %v2015_v51  ;;  %v182_v48 = vsub.f32 %v1786_v2, %v2010_v35  ;;  %v183_v11 = vsub.f32 %v1790_v4, %v2010_v35 }
  0xc0   :  { %v2041_v52 = vperm.slane %v379_v5, 0  ;;  %v283_v15 = vadd.f32 %v233_v6, %v232_v3  ;;  %v180_v26 = vsub.f32 %v1808_v13, %v2015_v51  ;;  %v188_v13 = vsub.f32 %v1800_v9, %v2015_v51 }
  0xc1   :  { %v352_v46 = vsub.f32 %v1932_v34, %v2022_v55  ;;  %v356_v2 = vsub.f32 %v1946_v53, %v2022_v55  ;;  %v351_v4 = vsub.f32 %v1940_v44, %v2025_v63  ;;  %v355_v33 = vsub.f32 %v1936_v42, %v2025_v63 }
  0xc2   :  { %v186_v34 = vsub.f32 %v1782_v0, %v1972_v54  ;;  %v230_v60 = vmul.f32 %v182_v48, %v182_v48  ;;  %v231_v57 = vmul.f32 %v183_v11, %v183_v11  ;;  %v360_v5 = vsub.f32 %v1950_v61, %v2022_v55  ;;  %284 = vadd.xlane.f32.xlu0 %v283_v15 }
  0xc3   :  { %v2058_v53 = vmul.f32 %v2031_v12, %v352_v46  ;;  %v181_v44 = vsub.f32 %v1810_v14, %v2015_v51  ;;  %v190_v42 = vsub.f32 %v1826_v22, %v2010_v35  ;;  %v228_v3 = vmul.f32 %v180_v26, %v180_v26 }
  0xc4   :  { %v280_v0 = vadd.f32 %v231_v57, %v230_v60  ;;  %v191_v48 = vsub.f32 %v1828_v23, %v2010_v35  ;;  %v2069_v61 = vmul.f32 %v2033_v47, %v356_v2  ;;  %v394_v46 = vmul.f32 %v2031_v12, %v351_v4 }
  0xc5   :  { %v398_v6 = vmul.f32 %v2033_v47, %v355_v33  ;;  %v229_v14 = vmul.f32 %v181_v44, %v181_v44  ;;  %v359_v22 = vsub.f32 %v1952_v62, %v2025_v63  ;;  %v238_v11 = vmul.f32 %v190_v42, %v190_v42 }
  0xc6   :  { %281 = vadd.xlane.f32.xlu2 %v280_v0  ;;  %v239_v15 = vmul.f32 %v191_v48, %v191_v48  ;;  %v189_v23 = vsub.f32 %v1802_v10, %v2015_v51  ;;  %v364_v9 = vsub.f32 %v1954_v17, %v2022_v55  ;;  %v368_v2 = vsub.f32 %v1982_v7, %v2022_v55 }
  0xc7   :  { %v277_v60 = vadd.f32 %v229_v14, %v228_v3  ;;  %v187_v4 = vsub.f32 %v1784_v1, %v1972_v54  ;;  %v2084_v33 = vmul.f32 %v2037_v45, %v360_v5  ;;  %v440_v62 = vsel %vm417_vm0, %v2058_v53, 0.0 }
  0xc8   :  { %v236_v57 = vmul.f32 %v188_v13, %v188_v13  ;;  %v237_v26 = vmul.f32 %v189_v23, %v189_v23  ;;  %v441_v10 = vsel %vm417_vm0, %v2069_v61, 0.0  ;;  %v363_v17 = vsub.f32 %v1956_v24, %v2025_v63 }
  0xc9   :  { %v542_v7 = vsel %vm530_vm1, %v394_v46, 0.0  ;;  %v543_v44 = vsel %vm530_vm1, %v398_v6, 0.0  ;;  %278 = vadd.xlane.f32.xlu1 %v277_v60  ;;  %v402_v1 = vmul.f32 %v2037_v45, %v359_v22  ;;  %v292_v5 = vadd.f32 %v239_v15, %v238_v11 }
  0xca   :  { %v196_v42 = vsub.f32 %v1844_v31, %v2015_v51  ;;  %v197_v0 = vsub.f32 %v1846_v32, %v2015_v51  ;;  %v429_v3 = vsel %vm417_vm0, %v394_v46, 0.0  ;;  %v430_v48 = vsel %vm417_vm0, %v398_v6, 0.0 }
  0xcb   :  { %v234_v13 = vmul.f32 %v186_v34, %v186_v34  ;;  %v235_v24 = vmul.f32 %v187_v4, %v187_v4  ;;  %v544_v14 = vadd.f32 %v543_v44, %v542_v7  ;;  %293 = vadd.xlane.f32.xlu0 %v292_v5  ;;  %v289_v23 = vadd.f32 %v237_v26, %v236_v57 }
  0xcc   :  { %v194_v60 = vsub.f32 %v1818_v18, %v1972_v54  ;;  %v195_v22 = vsub.f32 %v1820_v19, %v1972_v54  ;;  %v2106_v31 = vmul.f32 %v2039_v59, %v364_v9  ;;  %v2109_v32 = vmul.f32 %v2041_v52, %v368_v2 }
  0xcd   :  { %v442_v46 = vadd.f32 %v441_v10, %v440_v62  ;;  %v367_v34 = vsub.f32 %v1958_v25, %v2025_v63  ;;  %v406_v6 = vmul.f32 %v2039_v59, %v363_v17  ;;  %v431_v11 = vadd.f32 %v430_v48, %v429_v3 }
  0xce   :  { %290 = vadd.xlane.f32.xlu2 %v289_v23  ;;  %v244_v15 = vmul.f32 %v196_v42, %v196_v42  ;;  %v245_v4 = vmul.f32 %v197_v0, %v197_v0  ;;  %v545_v18 = vsel %vm530_vm1, %v402_v1, 0.0  ;;  %v286_v57 = vadd.f32 %v235_v24, %v234_v13 }
  0xcf   :  { %v192_v19 = vsub.f32 %v1822_v20, %v2008_v16  ;;  %v193_v9 = vsub.f32 %v1824_v21, %v2008_v16  ;;  %v443_v2 = vsel %vm417_vm0, %v2084_v33, 0.0  ;;  %v546_v62 = vadd.f32 %v545_v18, %v544_v14 }
  0xd0   :  { %v242_v25 = vmul.f32 %v194_v60, %v194_v60  ;;  %v243_v26 = vmul.f32 %v195_v22, %v195_v22  ;;  %v444_v10 = vadd.f32 %v443_v2, %v442_v46  ;;  %v445_v17 = vsel %vm417_vm0, %v2106_v31, 0.0 }
  0xd1   :  { %v371_v7 = vsub.f32 %v2003_v8, %v2025_v63  ;;  %v432_v44 = vsel %vm417_vm0, %v402_v1, 0.0  ;;  %287 = vadd.xlane.f32.xlu1 %v286_v57  ;;  %v301_v5 = vadd.f32 %v245_v4, %v244_v15  ;;  %v202_v21 = vsub.f32 %v1862_v40, %v1972_v54 }
  0xd2   :  { %v433_v20 = vadd.f32 %v432_v44, %v431_v11  ;;  %v203_v42 = vsub.f32 %v1864_v41, %v1972_v54  ;;  %v410_v0 = vmul.f32 %v2041_v52, %v367_v34  ;;  %v547_v3 = vsel %vm530_vm1, %v406_v6, 0.0 }
  0xd3   :  { %v240_v48 = vmul.f32 %v192_v19, %v192_v19  ;;  %v241_v13 = vmul.f32 %v193_v9, %v193_v9  ;;  %v548_v24 = vadd.f32 %v547_v3, %v546_v62  ;;  %302 = vadd.xlane.f32.xlu0 %v301_v5  ;;  %v298_v8 = vadd.f32 %v243_v26, %v242_v25 }
  0xd4   :  { %v200_v63 = vsub.f32 %v1836_v27, %v2008_v16  ;;  %v201_v1 = vsub.f32 %v1838_v28, %v2008_v16  ;;  %v372_v40 = vsub.f32 %v1998_v43, %v2022_v55  ;;  %v446_v14 = vadd.f32 %v445_v17, %v444_v10 }
  0xd5   :  { %v434_v41 = vsel %vm417_vm0, %v406_v6, 0.0  ;;  %v414_v23 = vmul.f32 %v2043_v56, %v371_v7  ;;  %v250_v22 = vmul.f32 %v202_v21, %v202_v21  ;;  %v251_v46 = vmul.f32 %v203_v42, %v203_v42 }
  0xd6   :  { %v435_v60 = vadd.f32 %v434_v41, %v433_v20  ;;  %299 = vadd.xlane.f32.xlu2 %v298_v8  ;;  %v549_v34 = vsel %vm530_vm1, %v410_v0, 0.0  ;;  %v295_v11 = vadd.f32 %v241_v13, %v240_v48  ;;  %v198_v27 = vsub.f32 %v1840_v29, %v2010_v35  ;;  %v2932_v8 = vld [vmem:[#allocation16_spill] sm:$0xff] }
  0xd7   :  { %v199_v28 = vsub.f32 %v1842_v30, %v2010_v35  ;;  %v447_v43 = vsel %vm417_vm0, %v2109_v32, 0.0  ;;  %v550_v55 = vadd.f32 %v549_v34, %v548_v24  ;;  %v248_v6 = vmul.f32 %v200_v63, %v200_v63  ;;  %v2933_v41 = vld [vmem:[#allocation8_spill] sm:$0xff] }
  0xd8   :  { %v249_v15 = vmul.f32 %v201_v1, %v201_v1  ;;  %v2148_v4 = vmul.f32 %v2043_v56, %v372_v40  ;;  %v448_v18 = vadd.f32 %v447_v43, %v446_v14  ;;  %v436_v57 = vsel %vm417_vm0, %v410_v0, 0.0 }
  0xd9   :  { %296 = vadd.xlane.f32.xlu1 %v295_v11  ;;  %v437_v19 = vadd.f32 %v436_v57, %v435_v60  ;;  %v310_v9 = vadd.f32 %v251_v46, %v250_v22  ;;  %v208_v29 = vsub.f32 %v1880_v49, %v2008_v16  ;;  %v209_v30 = vsub.f32 %v1882_v50, %v2008_v16  ;;  %v2935_v11 = vld [vmem:[#allocation10_spill] sm:$0xff] }
  0xda   :  { %v551_v2 = vsel %vm530_vm1, %v414_v23, 0.0  ;;  %v246_v62 = vmul.f32 %v198_v27, %v198_v27  ;;  %v247_v25 = vmul.f32 %v199_v28, %v199_v28  ;;  %v307_v10 = vadd.f32 %v249_v15, %v248_v6  ;;  %v2936_v28 = vld [vmem:[#allocation11_spill] sm:$0xff] }
  0xdb   :  { %v2156_v26 = vadd.f32 %v551_v2, %v550_v55  ;;  %311 = vadd.xlane.f32.xlu0 %v310_v9  ;;  %v206_v17 = vsub.f32 %v1854_v36, %v2010_v35  ;;  %v207_v7 = vsub.f32 %v1856_v37, %v2010_v35  ;;  %v449_v49 = vsel %vm417_vm0, %v2148_v4, 0.0 }
  0xdc   :  { %v438_v44 = vsel %vm417_vm0, %v414_v23, 0.0  ;;  %v2165_v50 = vadd.f32 %v449_v49, %v448_v18  ;;  %v256_v5 = vmul.f32 %v208_v29, %v208_v29  ;;  %v257_v21 = vmul.f32 %v209_v30, %v209_v30  ;;  %v2937_v18 = vld [vmem:[#allocation21_spill] sm:$0xff] }
  0xdd   :  { %v2167_v20 = vadd.f32 %v438_v44, %v437_v19  ;;  %v304_v42 = vadd.f32 %v247_v25, %v246_v62  ;;  %v204_v0 = vsub.f32 %v1858_v38, %v2015_v51  ;;  %v205_v36 = vsub.f32 %v1860_v39, %v2015_v51  ;;  %v2938_v19 = vld [vmem:[#allocation22_spill] sm:$0xff]  ;;  %v2939_v62 = vld [vmem:[#allocation12_spill] sm:$0xff] }
  0xde   :  { %308 = vadd.xlane.f32.xlu2 %v307_v10  ;;  %v254_v37 = vmul.f32 %v206_v17, %v206_v17  ;;  %v255_v3 = vmul.f32 %v207_v7, %v207_v7  ;;  %v2175_v48 = vadd.f32 %v2156_v26, %v2015_v51  ;;  %v214_v13 = vsub.f32 %v1898_v58, %v2010_v35  ;;  %v2934_v58 = vld [vmem:[#allocation9_spill] sm:$0xff] }
  0xdf   :  { %v319_v24 = vadd.f32 %v257_v21, %v256_v5  ;;  %v215_v63 = vsub.f32 %v2932_v8, %v2010_v35  ;;  %v2183_v38 = vadd.f32 %v2165_v50, %v2010_v35  ;;  %v2187_v39 = vadd.f32 %v2167_v20, %v2015_v51  ;;  %v2940_v10 = vld [vmem:[#allocation13_spill] sm:$0xff]  ;;  %v2941_v5 = vld [vmem:[#allocation14_spill] sm:$0xff] }
  0xe0   :  { %v252_v1 = vmul.f32 %v204_v0, %v204_v0  ;;  %v253_v40 = vmul.f32 %v205_v36, %v205_v36  ;;  %v316_v14 = vadd.f32 %v255_v3, %v254_v37  ;;  %v212_v23 = vsub.f32 %v2933_v41, %v2015_v51 }
  0xe1   :  { %305 = vadd.xlane.f32.xlu1 %v304_v42  ;;  %v213_v60 = vsub.f32 %v2934_v58, %v2015_v51  ;;  %v262_v22 = vmul.f32 %v214_v13, %v214_v13  ;;  %v263_v46 = vmul.f32 %v215_v63, %v215_v63  ;;  %v210_v27 = vsub.f32 %v2935_v11, %v1972_v54  ;;  %v2942_v42 = vld [vmem:[#allocation15_spill] sm:$0xff]  ;;  %v2945_v11 = vld [vmem:[#allocation17_spill] sm:$0xff] }
  0xe2   :  { %v313_v34 = vadd.f32 %v253_v40, %v252_v1  ;;  %v211_v43 = vsub.f32 %v2936_v28, %v1972_v54  ;;  %v260_v55 = vmul.f32 %v212_v23, %v212_v23  ;;  %v220_v57 = vsub.f32 %v2937_v18, %v2015_v51  ;;  %v2943_v63 = vld [vmem:[#allocation19_spill] sm:$0xff]  ;;  %v2944_v40 = vld [vmem:[#allocation20_spill] sm:$0xff]  ;;  %v2946_v28 = vld [vmem:[#allocation18_spill] sm:$0xff] }
  0xe3   :  { %320 = vadd.xlane.f32.xlu0 %v319_v24  ;;  %v261_v6 = vmul.f32 %v213_v60, %v213_v60  ;;  %v328_v15 = vadd.f32 %v263_v46, %v262_v22  ;;  %v221_v9 = vsub.f32 %v2938_v19, %v2015_v51  ;;  %v258_v29 = vmul.f32 %v210_v27, %v210_v27  ;;  %v649_v60 = vld [vmem:[%s2875_s2 + $0x30] sm:$0xff]  ;;  %v648_v22 = vld [vmem:[%s2875_s2 + $0x28] sm:$0xff]  ;;  %v2221_v46 = vpop.permute.xlu0 %755 }
  0xe4   :  { %v259_v30 = vmul.f32 %v211_v43, %v211_v43  ;;  %v218_v25 = vsub.f32 %v2939_v62, %v1972_v54  ;;  %v219_v17 = vsub.f32 %v2940_v10, %v1972_v54  ;;  %v268_v7 = vmul.f32 %v220_v57, %v220_v57  ;;  %v650_v57 = vld [vmem:[%s2875_s2 + $0x38] sm:$0xff] }
  0xe5   :  { %v325_v2 = vadd.f32 %v261_v6, %v260_v55  ;;  %v269_v49 = vmul.f32 %v221_v9, %v221_v9  ;;  %v216_v21 = vsub.f32 %v2941_v5, %v2008_v16  ;;  %v217_v51 = vsub.f32 %v2942_v42, %v2008_v16  ;;  %v2948_v62 = vld [vmem:[#allocation23_spill] sm:$0xff]  ;;  %v2949_v5 = vld [vmem:[#allocation26_spill] sm:$0xff] }
  0xe6   :  { %317 = vadd.xlane.f32.xlu2 %v316_v14  ;;  %v322_v44 = vadd.f32 %v259_v30, %v258_v29  ;;  %v266_v0 = vmul.f32 %v218_v25, %v218_v25  ;;  %v267_v36 = vmul.f32 %v219_v17, %v219_v17  ;;  %v222_v1 = vsub.f32 %v2943_v63, %v2010_v35  ;;  %v2947_v30 = vld [vmem:[#allocation24_spill] sm:$0xff] }
  0xe7   :  { %v337_v37 = vadd.f32 %v269_v49, %v268_v7  ;;  %v264_v3 = vmul.f32 %v216_v21, %v216_v21  ;;  %v265_v13 = vmul.f32 %v217_v51, %v217_v51  ;;  %v223_v14 = vsub.f32 %v2944_v40, %v2010_v35 }
  0xe8   :  { %v334_v24 = vadd.f32 %v267_v36, %v266_v0  ;;  %v270_v41 = vmul.f32 %v222_v1, %v222_v1  ;;  %v224_v27 = vsub.f32 %v2945_v11, %v2008_v16  ;;  %v225_v43 = vsub.f32 %v2946_v28, %v2008_v16 }
  0xe9   :  { %314 = vadd.xlane.f32.xlu1 %v313_v34  ;;  %v331_v8 = vadd.f32 %v265_v13, %v264_v3  ;;  %v271_v23 = vmul.f32 %v223_v14, %v223_v14  ;;  %v346_v9 = vmul.f32 256.0, %v1972_v54  ;;  %v2950_v3 = vld [vmem:[#allocation29_spill] sm:$0xff]  ;;  %v2951_v14 = vld [vmem:[#allocation30_spill] sm:$0xff] }
  0xea   :  { %v272_v55 = vmul.f32 %v224_v27, %v224_v27  ;;  %v273_v6 = vmul.f32 %v225_v43, %v225_v43 }
  0xeb   :  { %329 = vadd.xlane.f32.xlu0 %v328_v15  ;;  %v340_v58 = vadd.f32 %v271_v23, %v270_v41  ;;  %v354_v25 = vsub.f32 %v2948_v62, %v346_v9  ;;  %v358_v21 = vsub.f32 %v2949_v5, %v346_v9  ;;  %v362_v13 = vsub.f32 %v2950_v3, %v346_v9 }
  0xec   :  { %v343_v15 = vadd.f32 %v273_v6, %v272_v55  ;;  %v366_v41 = vsub.f32 %v2951_v14, %v346_v9 }
  0xed   :  { %v397_v49 = vmul.f32 %v2033_v47, %v354_v25 }
  0xee   :  { %326 = vadd.xlane.f32.xlu2 %v325_v2  ;;  %v350_v2 = vsub.f32 %v2947_v30, %v346_v9  ;;  %v409_v25 = vmul.f32 %v2041_v52, %v366_v41 }
  0xef   :  { %v419_v51 = vsel %vm417_vm0, %v397_v49, 0.0  ;;  %v532_v36 = vsel %vm530_vm1, %v397_v49, 0.0 }
  0xf0   :  { %v393_v7 = vmul.f32 %v2031_v12, %v350_v2 }
  0xf1   :  { %323 = vadd.xlane.f32.xlu1 %v322_v44 }
  0xf2   :  { %v418_v42 = vsel %vm417_vm0, %v393_v7, 0.0  ;;  %v531_v0 = vsel %vm530_vm1, %v393_v7, 0.0 }
  0xf3   :  { %338 = vadd.xlane.f32.xlu0 %v337_v37  ;;  %v420_v63 = vadd.f32 %v419_v51, %v418_v42  ;;  %v533_v1 = vadd.f32 %v532_v36, %v531_v0 }
  0xf6   :  { %335 = vadd.xlane.f32.xlu2 %v334_v24  ;;  %v401_v24 = vmul.f32 %v2037_v45, %v358_v21 }
  0xf9   :  { %332 = vadd.xlane.f32.xlu1 %v331_v8 }
 0x101   :  { %341 = vadd.xlane.f32.xlu1 %v340_v58  ;;  %v405_v58 = vmul.f32 %v2039_v59, %v362_v13  ;;  %v425_v13 = vsel %vm417_vm0, %v409_v25, 0.0 }
 0x103   :  { %v423_v7 = vsel %vm417_vm0, %v405_v58, 0.0  ;;  %v536_v49 = vsel %vm530_vm1, %v405_v58, 0.0 }
 0x107   :  { %761 = vrot.lane.b32.xlu0 %v650_v57, %s1745_s23  ;;  %v2952_v57 = vld [vmem:[#allocation31_spill] sm:$0xff] }
 0x108   :  { %v370_v30 = vsub.f32 %v2952_v57, %v346_v9 }
 0x10a   :  { %v413_v0 = vmul.f32 %v2043_v56, %v370_v30 }
 0x10c   :  { %v427_v58 = vsel %vm417_vm0, %v413_v0, 0.0 }
 0x10e   :  { %759 = vrot.lane.b32.xlu2 %v649_v60, %s1745_s23  ;;  %v421_v60 = vsel %vm417_vm0, %v401_v24, 0.0 }
 0x10f   :  { %v422_v27 = vadd.f32 %v421_v60, %v420_v63  ;;  %v540_v60 = vsel %vm530_vm1, %v413_v0, 0.0 }
 0x111   :  { %v424_v21 = vadd.f32 %v423_v7, %v422_v27 }
 0x11a   :  { %757 = vrot.lane.b32.xlu1 %v648_v22, %s1745_s23  ;;  %v534_v22 = vsel %vm530_vm1, %v401_v24, 0.0  ;;  %v538_v24 = vsel %vm530_vm1, %v409_v25, 0.0 }
 0x11b   :  { %v535_v28 = vadd.f32 %v534_v22, %v533_v1 }
 0x11d   :  { %v537_v42 = vadd.f32 %v536_v49, %v535_v28 }
 0x11f   :  { %v539_v14 = vadd.f32 %v538_v24, %v537_v42 }
 0x121   :  { %v2280_v27 = vadd.f32 %v540_v60, %v539_v14 }
 0x12a   :  { %v2223_v34 = vpop.xlane.xlu0 %275 }
 0x135   :  { %v285_v18 = vpop.xlane.xlu0 %284 }
 0x136   :  { %v465_v40 = vmul.f32 %v2031_v12, %v285_v18 }
 0x137   :  { %344 = vadd.xlane.f32.xlu2 %v343_v15 }
 0x138   :  { %v519_v43 = vsel %vm417_vm0, %v465_v40, 0.0  ;;  %v608_v55 = vsel %vm530_vm1, %v465_v40, 0.0  ;;  %v426_v40 = vadd.f32 %v425_v13, %v424_v21 }
 0x139   :  { %v2232_v19 = vpop.xlane.xlu2 %281 }
 0x13c   :  { %v2236_v29 = vpop.xlane.xlu1 %278 }
 0x13e   :  { %v2240_v10 = vpop.xlane.xlu0 %293 }
 0x141   :  { %v291_v17 = vpop.xlane.xlu2 %290 }
 0x144   :  { %v288_v44 = vpop.xlane.xlu1 %287 }
 0x145   :  { %v466_v30 = vmul.f32 %v2033_v47, %v288_v44  ;;  %v2309_v44 = vmul.f32 %v2167_v20, %v2167_v20 }
 0x146   :  { %v303_v37 = vpop.xlane.xlu0 %302 }
 0x147   :  { %v471_v25 = vmul.f32 %v2037_v45, %v303_v37  ;;  %v487_v37 = vsel %vm417_vm0, %v466_v30, 0.0 }
 0x149   :  { %v300_v8 = vpop.xlane.xlu2 %299  ;;  %v500_v20 = vsel %vm417_vm0, %v471_v25, 0.0  ;;  %v589_v24 = vsel %vm530_vm1, %v471_v25, 0.0 }
 0x14a   :  { %v470_v21 = vmul.f32 %v2037_v45, %v300_v8  ;;  %v2325_v8 = vmul.f32 %v2031_v12, %v2232_v19 }
 0x14c   :  { %v297_v23 = vpop.xlane.xlu1 %296 }
 0x14d   :  { %v469_v11 = vmul.f32 %v2033_v47, %v297_v23 }
 0x14e   :  { %v312_v18 = vpop.xlane.xlu0 %311 }
 0x14f   :  { %v520_v6 = vsel %vm417_vm0, %v469_v11, 0.0  ;;  %v609_v15 = vsel %vm530_vm1, %v469_v11, 0.0  ;;  %v2278_v11 = vadd.f32 %v427_v58, %v426_v40  ;;  %v578_v58 = vsel %vm530_vm1, %v470_v21, 0.0 }
 0x150   :  { %v521_v2 = vadd.f32 %v520_v6, %v519_v43  ;;  %v610_v62 = vadd.f32 %v609_v15, %v608_v55  ;;  %v462_v55 = vmul.f32 %v2031_v12, %v2223_v34  ;;  %v467_v6 = vmul.f32 %v2033_v47, %v291_v17 }
 0x151   :  { %v309_v5 = vpop.xlane.xlu2 %308  ;;  %v2297_v7 = vmul.f32 %v2278_v11, %v2278_v11 }
 0x152   :  { %v473_v51 = vmul.f32 %v2037_v45, %v309_v5  ;;  %v486_v34 = vsel %vm417_vm0, %v462_v55, 0.0  ;;  %v498_v17 = vsel %vm417_vm0, %v467_v6, 0.0  ;;  %v2305_v5 = vmul.f32 %v2280_v27, %v2280_v27 }
 0x154   :  { %v522_v36 = vsel %vm417_vm0, %v473_v51, 0.0  ;;  %v611_v3 = vsel %vm530_vm1, %v473_v51, 0.0  ;;  %v2269_v9 = vpop.xlane.xlu1 %305  ;;  %v575_v51 = vsel %vm530_vm1, %v462_v55, 0.0 }
 0x155   :  { %v523_v63 = vadd.f32 %v522_v36, %v521_v2  ;;  %v612_v1 = vadd.f32 %v611_v3, %v610_v62  ;;  %v463_v62 = vmul.f32 %v2031_v12, %v2236_v29  ;;  %v587_v29 = vsel %vm530_vm1, %v467_v6, 0.0 }
 0x156   :  { %v321_v41 = vpop.xlane.xlu0 %320  ;;  %v576_v3 = vsel %vm530_vm1, %v466_v30, 0.0 }
 0x157   :  { %v477_v23 = vmul.f32 %v2039_v59, %v321_v41  ;;  %v497_v0 = vsel %vm417_vm0, %v463_v62, 0.0  ;;  %v586_v36 = vsel %vm530_vm1, %v463_v62, 0.0  ;;  %v488_v41 = vadd.f32 %v487_v37, %v486_v34 }
 0x158   :  { %v499_v40 = vadd.f32 %v498_v17, %v497_v0  ;;  %v588_v14 = vadd.f32 %v587_v29, %v586_v36  ;;  %v577_v55 = vadd.f32 %v576_v3, %v575_v51 }
 0x159   :  { %v2276_v22 = vpop.xlane.xlu2 %317  ;;  %v524_v28 = vsel %vm417_vm0, %v477_v23, 0.0  ;;  %v613_v43 = vsel %vm530_vm1, %v477_v23, 0.0  ;;  %v489_v23 = vsel %vm417_vm0, %v470_v21, 0.0 }
 0x15a   :  { %v2287_v15 = vadd.f32 %v524_v28, %v523_v63  ;;  %v2289_v57 = vadd.f32 %v613_v43, %v612_v1  ;;  %v474_v63 = vmul.f32 %v2039_v59, %v312_v18  ;;  %v501_v18 = vadd.f32 %v500_v20, %v499_v40 }
 0x15b   :  { %v590_v6 = vadd.f32 %v589_v24, %v588_v14  ;;  %v490_v34 = vadd.f32 %v489_v23, %v488_v41  ;;  %v579_v17 = vadd.f32 %v578_v58, %v577_v55 }
 0x15c   :  { %v315_v2 = vpop.xlane.xlu1 %314  ;;  %v491_v19 = vsel %vm417_vm0, %v474_v63, 0.0 }
 0x15d   :  { %v475_v42 = vmul.f32 %v2039_v59, %v315_v2  ;;  %v580_v2 = vsel %vm530_vm1, %v474_v63, 0.0  ;;  %v492_v3 = vadd.f32 %v491_v19, %v490_v34  ;;  %v508_v34 = vsel %vm417_vm0, %v2325_v8, 0.0 }
 0x15e   :  { %v2301_v49 = vpop.xlane.xlu0 %329 }
 0x15f   :  { %v502_v60 = vsel %vm417_vm0, %v475_v42, 0.0  ;;  %v591_v28 = vsel %vm530_vm1, %v475_v42, 0.0  ;;  %v2338_v42 = vmul.f32 %v2033_v47, %v2240_v10 }
 0x160   :  { %v503_v29 = vadd.f32 %v502_v60, %v501_v18  ;;  %v592_v37 = vadd.f32 %v591_v28, %v590_v6  ;;  %v2360_v6 = vmul.f32 %v2039_v59, %v2276_v22 }
 0x161   :  { %v327_v13 = vpop.xlane.xlu2 %326  ;;  %v509_v28 = vsel %vm417_vm0, %v2338_v42, 0.0 }
 0x162   :  { %v479_v1 = vmul.f32 %v2041_v52, %v327_v13  ;;  %v581_v13 = vadd.f32 %v580_v2, %v579_v17 }
 0x164   :  { %v324_v43 = vpop.xlane.xlu1 %323  ;;  %v504_v62 = vsel %vm417_vm0, %v479_v1, 0.0  ;;  %v593_v25 = vsel %vm530_vm1, %v479_v1, 0.0  ;;  %v2345_v1 = vmul.f32 %v2037_v45, %v2269_v9  ;;  %v632_v9 = vmul.f32 %v2156_v26, %v2156_v26 }
 0x165   :  { %v478_v30 = vmul.f32 %v2041_v52, %v324_v43  ;;  %v505_v20 = vadd.f32 %v504_v62, %v503_v29  ;;  %v594_v24 = vadd.f32 %v593_v25, %v592_v37  ;;  %v2365_v62 = vmul.f32 %v2041_v52, %v2301_v49 }
 0x166   :  { %v339_v21 = vpop.xlane.xlu0 %338  ;;  %v511_v17 = vsel %vm417_vm0, %v2345_v1, 0.0  ;;  %v510_v29 = vadd.f32 %v509_v28, %v508_v34 }
 0x167   :  { %v493_v51 = vsel %vm417_vm0, %v478_v30, 0.0  ;;  %v582_v0 = vsel %vm530_vm1, %v478_v30, 0.0  ;;  %v483_v36 = vmul.f32 %v2043_v56, %v339_v21 }
 0x168   :  { %v494_v41 = vadd.f32 %v493_v51, %v492_v3  ;;  %v583_v23 = vadd.f32 %v582_v0, %v581_v13  ;;  %v512_v0 = vadd.f32 %v511_v17, %v510_v29 }
 0x169   :  { %v336_v63 = vpop.xlane.xlu2 %335  ;;  %v506_v10 = vsel %vm417_vm0, %v483_v36, 0.0  ;;  %v595_v14 = vsel %vm530_vm1, %v483_v36, 0.0  ;;  %v515_v36 = vsel %vm417_vm0, %v2365_v62, 0.0 }
 0x16a   :  { %v482_v40 = vmul.f32 %v2043_v56, %v336_v63  ;;  %v507_v58 = vadd.f32 %v506_v10, %v505_v20  ;;  %v596_v60 = vadd.f32 %v595_v14, %v594_v24  ;;  %v621_v14 = vmul.f32 %v2165_v50, %v2165_v50 }
 0x16c   :  { %v495_v43 = vsel %vm417_vm0, %v482_v40, 0.0  ;;  %v584_v55 = vsel %vm530_vm1, %v482_v40, 0.0  ;;  %v2354_v18 = vpop.xlane.xlu1 %332  ;;  %v624_v2 = vsub.f32 %v507_v58, %v2309_v44  ;;  %v636_v25 = vsub.f32 %v596_v60, %v632_v9 }
 0x16d   :  { %v496_v30 = vadd.f32 %v495_v43, %v494_v41  ;;  %v585_v19 = vadd.f32 %v584_v55, %v583_v23  ;;  %v513_v44 = vsel %vm417_vm0, %v2360_v6, 0.0 }
 0x16e   :  { %v628_v37 = vmax.f32 %v624_v2, 0.0  ;;  %v640_v21 = vmax.f32 %v636_v25, 0.0 }
 0x16f   :  { %v623_v26 = vsub.f32 %v496_v30, %v2297_v7  ;;  %v635_v22 = vsub.f32 %v585_v19, %v2305_v5  ;;  %v514_v7 = vadd.f32 %v513_v44, %v512_v0 }
 0x170   :  { %v660_v3 = vadd.f32 1e-05, %v628_v37  ;;  %v2379_v24 = vadd.f32 1e-05, %v640_v21 }
 0x171   :  { %v627_v51 = vmax.f32 %v623_v26, 0.0  ;;  %v639_v49 = vmax.f32 %v635_v22, 0.0  ;;  %v516_v40 = vadd.f32 %v515_v36, %v514_v7 }
 0x172   :  { %1626 = vrsqrt.f32 %v660_v3  ;;  %vm679_vm3 = vweird.f32 %v660_v3  ;;  %vm727_vm11 = vweird.f32 %v2379_v24 }
 0x173   :  { %v659_v13 = vadd.f32 1e-05, %v627_v51  ;;  %v2377_v20 = vadd.f32 1e-05, %v639_v49  ;;  %v644_v49 = vld [vmem:[%s2875_s2 + $0x8] sm:$0xff] }
 0x174   :  { %v342_v5 = vpop.xlane.xlu1 %341 }
 0x175   :  { %1628 = vrsqrt.f32 %v659_v13  ;;  %v2382_v63 = vmul.f32 %v2043_v56, %v342_v5  ;;  %v643_v5 = vld [vmem:[%s2875_s2] sm:$0xff]  ;;  %vm669_vm6 = vweird.f32 %v659_v13  ;;  %vm717_vm10 = vweird.f32 %v2377_v20 }
 0x176   :  { %1630 = vrsqrt.f32 %v2377_v20 }
 0x177   :  { %1632 = vrsqrt.f32 %v2379_v24  ;;  %v517_v10 = vsel %vm417_vm0, %v2382_v63, 0.0 }
 0x178   :  { %v518_v41 = vadd.f32 %v517_v10, %v516_v40  ;;  %v1627_v23 = vpop.eup %1626 }
 0x179   :  { %v674_v28 = vmul.f32 %v1627_v23, %v660_v3  ;;  %vm680_vm2 = vweird.f32 %v1627_v23  ;;  %v553_v3 = vsel %vm530_vm1, %v2058_v53, 0.0  ;;  %v771_v53 = vadd.f32 %v2278_v11, %v1972_v54 }
 0x17a   :  { %v625_v58 = vsub.f32 %v518_v41, %v621_v14  ;;  %vm681_vm5 = vmor %vm679_vm3, %vm680_vm2  ;;  %v554_v41 = vsel %vm530_vm1, %v2069_v61, 0.0  ;;  %v2416_v61 = vmul.f32 256.0, %v2008_v16 }
 0x17b   :  { %v1629_v60 = vpop.eup %1628  ;;  %v675_v2 = vmul.f32 %v1627_v23, %v674_v28 }
 0x17c   :  { %v2390_v43 = vpop.eup %1630  ;;  %v664_v55 = vmul.f32 %v1629_v60, %v659_v13  ;;  %v629_v9 = vmax.f32 %v625_v58, 0.0  ;;  %vm670_vm4 = vweird.f32 %v1629_v60 }
 0x17d   :  { %v1633_v30 = vpop.eup %1632  ;;  %v712_v19 = vmul.f32 %v2390_v43, %v2377_v20  ;;  %v676_v50 = vmul.f32 0.5, %v675_v2  ;;  %vm671_vm7 = vmor %vm669_vm6, %vm670_vm4  ;;  %vm718_vm8 = vweird.f32 %v2390_v43 }
 0x17e   :  { %v2394_v25 = vadd.f32 1e-05, %v629_v9  ;;  %v722_v34 = vmul.f32 %v1633_v30, %v2379_v24  ;;  %v665_v17 = vmul.f32 %v1629_v60, %v664_v55  ;;  %vm728_vm9 = vweird.f32 %v1633_v30  ;;  %vm719_vm12 = vmor %vm717_vm10, %vm718_vm8  ;;  %v2954_v24 = vld [vmem:[#allocation27_spill] sm:$0xff] }
 0x17f   :  { %v713_v26 = vmul.f32 %v2390_v43, %v712_v19  ;;  %v677_v37 = vsub.f32 1.5, %v676_v50  ;;  %vm729_vm13 = vmor %vm727_vm11, %vm728_vm9 }
 0x180   :  { %1634 = vrsqrt.f32 %v2394_v25  ;;  %v723_v22 = vmul.f32 %v1633_v30, %v722_v34  ;;  %v666_v29 = vmul.f32 0.5, %v665_v17  ;;  %v555_v34 = vadd.f32 %v554_v41, %v553_v3 }
 0x181   :  { %v714_v21 = vmul.f32 0.5, %v713_v26  ;;  %v678_v0 = vmul.f32 %v1627_v23, %v677_v37  ;;  %v357_v37 = vsub.f32 %v2954_v24, %v2416_v61  ;;  %vm689_vm15 = vweird.f32 %v2394_v25 }
 0x182   :  { %v724_v44 = vmul.f32 0.5, %v723_v22  ;;  %v667_v51 = vsub.f32 1.5, %v666_v29  ;;  %v2953_v22 = vld [vmem:[#allocation25_spill] sm:$0xff] }
 0x183   :  { %v715_v36 = vsub.f32 1.5, %v714_v21  ;;  %v682_v10 = vsel %vm681_vm5, %v1627_v23, %v678_v0  ;;  %v353_v20 = vsub.f32 %v2953_v22, %v2416_v61  ;;  %v556_v21 = vsel %vm530_vm1, %v2084_v33, 0.0 }
 0x184   :  { %v725_v7 = vsub.f32 1.5, %v724_v44  ;;  %v668_v40 = vmul.f32 %v1629_v60, %v667_v51  ;;  %v704_v58 = vmul.f32 %v682_v10, %v644_v49  ;;  %v557_v51 = vadd.f32 %v556_v21, %v555_v34  ;;  %v2958_v21 = vld [vmem:[#allocation34_spill] sm:$0xff] }
 0x185   :  { %v716_v9 = vmul.f32 %v2390_v43, %v715_v36  ;;  %v396_v0 = vmul.f32 %v2031_v12, %v353_v20  ;;  %v400_v33 = vmul.f32 %v2033_v47, %v357_v37 }
 0x186   :  { %v1635_v14 = vpop.eup %1634  ;;  %v672_v55 = vsel %vm671_vm7, %v1629_v60, %v668_v40  ;;  %v726_v19 = vmul.f32 %v1633_v30, %v725_v7  ;;  %817 = vrot.lane.b32.xlu0 %v704_v58, %s1746_s9  ;;  %v2420_v60 = vmul.f32 %v2187_v39, %v704_v58  ;;  %v597_v40 = vsel %vm530_vm1, %v2325_v8, 0.0 }
 0x187   :  { %v684_v28 = vmul.f32 %v1635_v14, %v2394_v25  ;;  %v703_v13 = vmul.f32 %v672_v55, %v643_v5  ;;  %v720_v11 = vsel %vm719_vm12, %v2390_v43, %v716_v9  ;;  %vm690_vm14 = vweird.f32 %v1635_v14  ;;  %v645_v43 = vld [vmem:[%s2875_s2 + $0x10] sm:$0xff] }
 0x188   :  { %v730_v26 = vsel %vm729_vm13, %v1633_v30, %v726_v19  ;;  %v767_v44 = vmul.f32 %v2221_v46, %v720_v11  ;;  %vm691_vm2 = vmor %vm689_vm15, %vm690_vm14  ;;  %v558_v46 = vsel %vm530_vm1, %v2106_v31, 0.0  ;;  %v600_v25 = vsel %vm530_vm1, %v2345_v1, 0.0  ;;  %v2956_v19 = vld [vmem:[#allocation32_spill] sm:$0xff] }
 0x189   :  { %v685_v23 = vmul.f32 %v1635_v14, %v684_v28  ;;  %815 = vrot.lane.b32.xlu1 %v703_v13, %s1746_s9  ;;  %v2424_v2 = vmul.f32 %v771_v53, %v703_v13  ;;  %v559_v5 = vadd.f32 %v558_v46, %v557_v51  ;;  %v451_v41 = vsel %vm417_vm0, %v396_v0, 0.0 }
 0x18a   :  { %v560_v58 = vsel %vm530_vm1, %v2109_v32, 0.0  ;;  %v602_v8 = vsel %vm530_vm1, %v2360_v6, 0.0  ;;  %v564_v1 = vsel %vm530_vm1, %v396_v0, 0.0  ;;  %v565_v28 = vsel %vm530_vm1, %v400_v33, 0.0 }
 0x18b   :  { %v686_v17 = vmul.f32 0.5, %v685_v23  ;;  %v604_v9 = vsel %vm530_vm1, %v2365_v62, 0.0  ;;  %v365_v13 = vsub.f32 %v2956_v19, %v2416_v61  ;;  %v566_v32 = vadd.f32 %v565_v28, %v564_v1 }
 0x18c   :  { %v758_v50 = vpop.permute.xlu1 %757  ;;  %v562_v6 = vsel %vm530_vm1, %v2148_v4, 0.0  ;;  %v373_v51 = vsub.f32 %v2958_v21, %v2416_v61 }
 0x18d   :  { %v768_v29 = vmul.f32 %v758_v50, %v730_v26  ;;  %v687_v39 = vsub.f32 1.5, %v686_v17  ;;  %v606_v17 = vsel %vm530_vm1, %v2382_v63, 0.0  ;;  %v2957_v26 = vld [vmem:[#allocation33_spill] sm:$0xff]  ;;  %v408_v22 = vmul.f32 %v2039_v59, %v365_v13 }
 0x18e   :  { %855 = vrot.lane.b32.xlu0 %v767_v44, %s1746_s9  ;;  %v369_v62 = vsub.f32 %v2957_v26, %v2416_v61 }
 0x18f   :  { %v2435_v49 = vmul.f32 %v2175_v48, %v768_v29  ;;  %v688_v30 = vmul.f32 %v1635_v14, %v687_v39  ;;  %v598_v48 = vsel %vm530_vm1, %v2338_v42, 0.0  ;;  %v452_v42 = vsel %vm417_vm0, %v400_v33, 0.0 }
 0x190   :  { %v599_v31 = vadd.f32 %v598_v48, %v597_v40  ;;  %v453_v34 = vadd.f32 %v452_v42, %v451_v41  ;;  %v569_v0 = vsel %vm530_vm1, %v408_v22, 0.0  ;;  %v2492_v48 = vpop.permute.xlu2 %759 }
 0x191   :  { %v692_v36 = vsel %vm691_vm2, %v1635_v14, %v688_v30  ;;  %v2955_v14 = vld [vmem:[#allocation28_spill] sm:$0xff]  ;;  %v456_v30 = vsel %vm417_vm0, %v408_v22, 0.0 }
 0x192   :  { %v705_v7 = vmul.f32 %v692_v36, %v645_v43  ;;  %v361_v3 = vsub.f32 %v2955_v14, %v2416_v61  ;;  %v601_v55 = vadd.f32 %v600_v25, %v599_v31  ;;  %v783_v43 = vadd.f32 %v2280_v27, %v1972_v54 }
 0x193   :  { %v481_v27 = vmul.f32 %v2041_v52, %v2354_v18 }
 0x194   :  { %819 = vrot.lane.b32.xlu2 %v705_v7, %s1746_s9  ;;  %v2454_v10 = vmul.f32 %v2183_v38, %v705_v7  ;;  %v561_v38 = vadd.f32 %v560_v58, %v559_v5  ;;  %v404_v53 = vmul.f32 %v2037_v45, %v361_v3  ;;  %v603_v23 = vadd.f32 %v602_v8, %v601_v55 }
 0x195   :  { %v787_v7 = vmul.f32 %v783_v43, %v767_v44  ;;  %v416_v5 = vmul.f32 %v2043_v56, %v373_v51  ;;  %v526_v44 = vsel %vm417_vm0, %v481_v27, 0.0  ;;  %v615_v41 = vsel %vm530_vm1, %v481_v27, 0.0 }
 0x196   :  { %v2475_v11 = vadd.f32 %v562_v6, %v561_v38  ;;  %v605_v50 = vadd.f32 %v604_v9, %v603_v23  ;;  %v454_v20 = vsel %vm417_vm0, %v404_v53, 0.0  ;;  %v567_v39 = vsel %vm530_vm1, %v404_v53, 0.0 }
 0x197   :  { %v455_v37 = vadd.f32 %v454_v20, %v453_v34  ;;  %v568_v4 = vadd.f32 %v567_v39, %v566_v32  ;;  %v460_v3 = vsel %vm417_vm0, %v416_v5, 0.0  ;;  %v573_v31 = vsel %vm530_vm1, %v416_v5, 0.0 }
 0x198   :  { %v607_v24 = vadd.f32 %v606_v17, %v605_v50  ;;  %v633_v63 = vmul.f32 %v2475_v11, %v2475_v11  ;;  %v527_v38 = vadd.f32 %v526_v44, %v2287_v15  ;;  %v616_v18 = vadd.f32 %v615_v41, %v2289_v57 }
 0x199   :  { %v457_v33 = vadd.f32 %v456_v30, %v455_v37  ;;  %v570_v46 = vadd.f32 %v569_v0, %v568_v4  ;;  %v646_v0 = vld [vmem:[%s2875_s2 + $0x18] sm:$0xff]  ;;  %v785_v41 = vadd.f32 %v2475_v11, %v2010_v35 }
 0x19a   :  { %v637_v36 = vsub.f32 %v607_v24, %v633_v63  ;;  %v654_v35 = vld [vmem:[%s2876_s3 + $0x18] sm:$0xff] }
 0x19c   :  { %857 = vrot.lane.b32.xlu2 %v768_v29, %s1746_s9  ;;  %v412_v29 = vmul.f32 %v2041_v52, %v369_v62  ;;  %v641_v40 = vmax.f32 %v637_v36, 0.0 }
 0x19e   :  { %v458_v61 = vsel %vm417_vm0, %v412_v29, 0.0  ;;  %v571_v54 = vsel %vm530_vm1, %v412_v29, 0.0  ;;  %v709_v42 = vadd.f32 1e-05, %v641_v40 }
 0x19f   :  { %v459_v25 = vadd.f32 %v458_v61, %v457_v33  ;;  %v572_v14 = vadd.f32 %v571_v54, %v570_v46  ;;  %v762_v46 = vpop.permute.xlu0 %761 }
 0x1a0   :  { %1636 = vrsqrt.f32 %v709_v42  ;;  %vm737_vm8 = vweird.f32 %v709_v42 }
 0x1a1   :  { %v461_v58 = vadd.f32 %v460_v3, %v459_v25  ;;  %v574_v8 = vadd.f32 %v573_v31, %v572_v14 }
 0x1a3   :  { %v622_v19 = vmul.f32 %v461_v58, %v461_v58  ;;  %v634_v13 = vmul.f32 %v574_v8, %v574_v8  ;;  %v774_v27 = vadd.f32 %v461_v58, %v2008_v16  ;;  %v786_v40 = vadd.f32 %v574_v8, %v2008_v16  ;;  %v651_v16 = vld [vmem:[%s2876_s3] sm:$0xff] }
 0x1a4   :  { %795 = vrot.lane.b32.xlu2 %v787_v7, %s1747_s12  ;;  %v779_v58 = vsub.f32 %v651_v16, %v2424_v2  ;;  %v652_v2 = vld [vmem:[%s2876_s3 + $0x8] sm:$0xff] }
 0x1a5   :  { %v656_v16 = vld [vmem:[%s2876_s3 + $0x28] sm:$0xff] }
 0x1a6   :  { %v1637_v50 = vpop.eup %1636 }
 0x1a7   :  { %v732_v22 = vmul.f32 %v1637_v50, %v709_v42  ;;  %vm738_vm6 = vweird.f32 %v1637_v50 }
 0x1a8   :  { %vm739_vm9 = vmor %vm737_vm8, %vm738_vm6 }
 0x1a9   :  { %v733_v15 = vmul.f32 %v1637_v50, %v732_v22 }
 0x1aa   :  { %v345_v1 = vpop.xlane.xlu2 %344 }
 0x1ab   :  { %v485_v28 = vmul.f32 %v2043_v56, %v345_v1  ;;  %v734_v37 = vmul.f32 0.5, %v733_v15  ;;  %v780_v1 = vsub.f32 %v652_v2, %v2420_v60 }
 0x1ad   :  { %v528_v55 = vsel %vm417_vm0, %v485_v28, 0.0  ;;  %v617_v9 = vsel %vm530_vm1, %v485_v28, 0.0  ;;  %v735_v43 = vsub.f32 1.5, %v734_v37 }
 0x1ae   :  { %v529_v53 = vadd.f32 %v528_v55, %v527_v38  ;;  %v618_v23 = vadd.f32 %v617_v9, %v616_v18 }
 0x1af   :  { %v736_v7 = vmul.f32 %v1637_v50, %v735_v43 }
 0x1b0   :  { %v626_v34 = vsub.f32 %v529_v53, %v622_v19  ;;  %v638_v32 = vsub.f32 %v618_v23, %v634_v13 }
 0x1b1   :  { %v740_v14 = vsel %vm739_vm9, %v1637_v50, %v736_v7  ;;  %v657_v7 = vld [vmem:[%s2876_s3 + $0x30] sm:$0xff] }
 0x1b2   :  { %v630_v6 = vmax.f32 %v626_v34, 0.0  ;;  %v642_v17 = vmax.f32 %v638_v32, 0.0  ;;  %v769_v44 = vmul.f32 %v2492_v48, %v740_v14  ;;  %v653_v48 = vld [vmem:[%s2876_s3 + $0x10] sm:$0xff] }
 0x1b3   :  { %v781_v11 = vsub.f32 %v653_v48, %v2454_v10 }
 0x1b4   :  { %v662_v26 = vadd.f32 1e-05, %v630_v6  ;;  %v710_v62 = vadd.f32 1e-05, %v642_v17  ;;  %v789_v42 = vmul.f32 %v785_v41, %v769_v44 }
 0x1b6   :  { %1638 = vrsqrt.f32 %v662_v26  ;;  %vm699_vm3 = vweird.f32 %v662_v26  ;;  %vm747_vm4 = vweird.f32 %v710_v62 }
 0x1b7   :  { %1640 = vrsqrt.f32 %v710_v62 }
 0x1bc   :  { %v1639_v57 = vpop.eup %1638 }
 0x1bd   :  { %v1641_v20 = vpop.eup %1640  ;;  %v694_v39 = vmul.f32 %v1639_v57, %v662_v26  ;;  %vm700_vm0 = vweird.f32 %v1639_v57 }
 0x1be   :  { %v742_v24 = vmul.f32 %v1641_v20, %v710_v62  ;;  %vm748_vm1 = vweird.f32 %v1641_v20  ;;  %vm701_vm5 = vmor %vm699_vm3, %vm700_vm0 }
 0x1bf   :  { %v695_v4 = vmul.f32 %v1639_v57, %v694_v39  ;;  %vm749_vm7 = vmor %vm747_vm4, %vm748_vm1 }
 0x1c0   :  { %v743_v63 = vmul.f32 %v1641_v20, %v742_v24 }
 0x1c1   :  { %v696_v21 = vmul.f32 0.5, %v695_v4 }
 0x1c2   :  { %v744_v51 = vmul.f32 0.5, %v743_v63 }
 0x1c3   :  { %v697_v29 = vsub.f32 1.5, %v696_v21 }
 0x1c4   :  { %v745_v30 = vsub.f32 1.5, %v744_v51 }
 0x1c5   :  { %v698_v36 = vmul.f32 %v1639_v57, %v697_v29  ;;  %v655_v29 = vld [vmem:[%s2876_s3 + $0x20] sm:$0xff] }
 0x1c6   :  { %v746_v33 = vmul.f32 %v1641_v20, %v745_v30 }
 0x1c7   :  { %v702_v5 = vsel %vm701_vm5, %v1639_v57, %v698_v36 }
 0x1c8   :  { %v750_v61 = vsel %vm749_vm7, %v1641_v20, %v746_v33  ;;  %v706_v54 = vmul.f32 %v702_v5, %v646_v0  ;;  %v1748_v20 = vmov 2  }
 0x1c9   :  { %v770_v25 = vmul.f32 %v762_v46, %v750_v61  ;;  %1624 = vset.pattern.permute.xlu2 %v1748_v20  ;;  %1623 = vset.pattern.permute.xlu0 %v1748_v20  ;;  %v658_v46 = vld [vmem:[%s2876_s3 + $0x38] sm:$0xff]  ;;  %s1750_s3 = smov [#allocation5]  }
 0x1ca   :  { %821 = vrot.lane.b32.xlu1 %v706_v54, %s1746_s9  ;;  %v778_v3 = vmul.f32 %v774_v27, %v706_v54  ;;  %s1599_s5 = sshll.u32 %s1750_s3, 4  ;;  %s1600_s5 = int_to_ptr.vmem [resolvable:$true] %s1599_s5 }
 0x1cb   :  { %v790_v31 = vmul.f32 %v786_v40, %v770_v25  ;;  %861 = vrot.lane.b32.xlu0 %v770_v25, %s1746_s9  ;;  %1625 = vset.pattern.permute.xlu1 %v1748_v20 }
 0x1cc   :  { %v782_v8 = vsub.f32 %v654_v35, %v778_v3 }
 0x1cd   :  { %801 = vrot.lane.b32.xlu2 %v790_v31, %s1747_s12 }
 0x1d2   :  { %859 = vrot.lane.b32.xlu1 %v769_v44, %s1746_s9 }
 0x1d3   :  { %799 = vrot.lane.b32.xlu0 %v789_v42, %s1747_s12 }
 0x1d5   :  { %1015 = vrot.lane.b32.xlu2 %v779_v58, %s1746_s9 }
 0x1da   :  { %797 = vrot.lane.b32.xlu1 %v2435_v49, %s1747_s12 }
 0x1db   :  { %1019 = vrot.lane.b32.xlu0 %v781_v11, %s1746_s9 }
 0x1dd   :  { %1021 = vrot.lane.b32.xlu2 %v782_v8, %s1746_s9 }
 0x1e2   :  { %1017 = vrot.lane.b32.xlu1 %v780_v1, %s1746_s9 }
 0x1ee   :  { %v2543_v28 = vpop.permute.xlu2 %819 }
 0x1ef   :  { %v833_v1 = vmul.f32 %v2543_v28, %v2033_v47 }
 0x1f6   :  { %v858_v38 = vpop.permute.xlu2 %857 }
 0x1f7   :  { %v868_v10 = vmul.f32 %v858_v38, %v2031_v12  ;;  %v872_v50 = vmul.f32 %v858_v38, %v2033_v47  ;;  %v880_v26 = vmul.f32 %v858_v38, %v2039_v59  ;;  %v876_v62 = vmul.f32 %v858_v38, %v2037_v45 }
 0x1f8   :  { %v2547_v49 = vpop.permute.xlu0 %817  ;;  %v884_v30 = vmul.f32 %v858_v38, %v2041_v52  ;;  %v888_v33 = vmul.f32 %v858_v38, %v2043_v56 }
 0x1f9   :  { %917 = vrot.lane.b32.xlu1 %v868_v10, %s1747_s12  ;;  %v828_v3 = vmul.f32 %v2547_v49, %v2031_v12  ;;  %v832_v20 = vmul.f32 %v2547_v49, %v2033_v47 }
 0x1fb   :  { %v2553_v60 = vpop.permute.xlu1 %815 }
 0x1fc   :  { %v827_v48 = vmul.f32 %v2553_v60, %v2031_v12 }
 0x1fe   :  { %v796_v63 = vpop.permute.xlu2 %795 }
 0x1ff   :  { %v807_v0 = vsub.f32 %v655_v29, %v796_v63  ;;  %v835_v29 = vmul.f32 %v2553_v60, %v2037_v45 }
 0x200   :  { %v856_v18 = vpop.permute.xlu0 %855 }
 0x201   :  { %v871_v55 = vmul.f32 %v856_v18, %v2033_v47  ;;  %v867_v9 = vmul.f32 %v856_v18, %v2031_v12  ;;  %v875_v22 = vmul.f32 %v856_v18, %v2037_v45  ;;  %v883_v15 = vmul.f32 %v856_v18, %v2041_v52 }
 0x202   :  { %v879_v57 = vmul.f32 %v856_v18, %v2039_v59  ;;  %v887_v54 = vmul.f32 %v856_v18, %v2043_v56  ;;  %v836_v18 = vmul.f32 %v2547_v49, %v2037_v45 }
 0x203   :  { %923 = vrot.lane.b32.xlu1 %v871_v55, %s1747_s12  ;;  %915 = vrot.lane.b32.xlu2 %v867_v9, %s1747_s12 }
 0x227   :  { %v802_v36 = vpop.permute.xlu2 %801 }
 0x228   :  { %v810_v27 = vsub.f32 %v658_v46, %v802_v36 }
 0x22f   :  { %v2615_v25 = vpop.permute.xlu2 %1015 }
 0x237   :  { %v2622_v41 = vpop.permute.xlu2 %1021 }
 0x23c   :  { %v2555_v19 = vpop.permute.xlu1 %821 }
 0x23d   :  { %v2557_v13 = vpop.permute.xlu0 %861  ;;  %v830_v11 = vmul.f32 %v2555_v19, %v2031_v12 }
 0x23e   :  { %v874_v53 = vmul.f32 %v2557_v13, %v2033_v47  ;;  %v870_v23 = vmul.f32 %v2557_v13, %v2031_v12  ;;  %v878_v39 = vmul.f32 %v2557_v13, %v2037_v45  ;;  %v886_v24 = vmul.f32 %v2557_v13, %v2041_v52 }
 0x23f   :  { %v882_v37 = vmul.f32 %v2557_v13, %v2039_v59  ;;  %v890_v31 = vmul.f32 %v2557_v13, %v2043_v56 }
 0x240   :  { %929 = vrot.lane.b32.xlu1 %v874_v53, %s1747_s12  ;;  %921 = vrot.lane.b32.xlu2 %v870_v23, %s1747_s12  ;;  %v839_v23 = vmul.f32 %v2553_v60, %v2039_v59 }
 0x244   :  { %v860_v34 = vpop.permute.xlu1 %859 }
 0x245   :  { %v869_v32 = vmul.f32 %v860_v34, %v2031_v12  ;;  %v877_v6 = vmul.f32 %v860_v34, %v2037_v45  ;;  %v873_v17 = vmul.f32 %v860_v34, %v2033_v47  ;;  %v881_v4 = vmul.f32 %v860_v34, %v2039_v59  ;;  %v800_v5 = vpop.permute.xlu0 %799 }
 0x246   :  { %v889_v21 = vmul.f32 %v860_v34, %v2043_v56  ;;  %v885_v51 = vmul.f32 %v860_v34, %v2041_v52  ;;  %v809_v40 = vsub.f32 %v657_v7, %v800_v5 }
 0x247   :  { %919 = vrot.lane.b32.xlu0 %v869_v32, %s1747_s12 }
 0x248   :  { %935 = vrot.lane.b32.xlu1 %v877_v6, %s1747_s12  ;;  %927 = vrot.lane.b32.xlu2 %v873_v17, %s1747_s12  ;;  %v829_v6 = vmul.f32 %v2543_v28, %v2031_v12 }
 0x24c   :  { %v798_v43 = vpop.permute.xlu1 %797 }
 0x24d   :  { %v808_v42 = vsub.f32 %v656_v16, %v798_v43  ;;  %v2635_v13 = vpop.permute.xlu0 %1019  ;;  %v834_v43 = vmul.f32 %v2555_v19, %v2033_v47  ;;  %v841_v16 = vmul.f32 %v2543_v28, %v2039_v59 }
 0x24f   :  { %925 = vrot.lane.b32.xlu0 %v872_v50, %s1747_s12  ;;  %v842_v50 = vmul.f32 %v2555_v19, %v2039_v59 }
 0x250   :  { %941 = vrot.lane.b32.xlu1 %v880_v26, %s1747_s12  ;;  %933 = vrot.lane.b32.xlu2 %v876_v62, %s1747_s12 }
 0x254   :  { %v2611_v61 = vpop.permute.xlu1 %1017 }
 0x257   :  { %931 = vrot.lane.b32.xlu0 %v875_v22, %s1747_s12 }
 0x258   :  { %947 = vrot.lane.b32.xlu1 %v883_v15, %s1747_s12  ;;  %939 = vrot.lane.b32.xlu2 %v879_v57, %s1747_s12  ;;  %v831_v57 = vmul.f32 %v2553_v60, %v2033_v47 }
 0x25d   :  { %v916_v58 = vpop.permute.xlu2 %915 }
 0x25e   :  { %v987_v35 = vadd.f32 %v916_v58, %v827_v48 }
 0x25f   :  { %937 = vrot.lane.b32.xlu0 %v878_v39, %s1747_s12  ;;  %v845_v39 = vmul.f32 %v2543_v28, %v2041_v52 }
 0x260   :  { %953 = vrot.lane.b32.xlu1 %v886_v24, %s1747_s12  ;;  %945 = vrot.lane.b32.xlu2 %v882_v37, %s1747_s12 }
 0x267   :  { %943 = vrot.lane.b32.xlu0 %v881_v4, %s1747_s12 }
 0x268   :  { %959 = vrot.lane.b32.xlu1 %v889_v21, %s1747_s12  ;;  %951 = vrot.lane.b32.xlu2 %v885_v51, %s1747_s12 }
 0x26b   :  { %v918_v14 = vpop.permute.xlu1 %917 }
 0x26c   :  { %v988_v44 = vadd.f32 %v918_v14, %v828_v3 }
 0x26f   :  { %949 = vrot.lane.b32.xlu0 %v884_v30, %s1747_s12  ;;  %v848_v30 = vmul.f32 %v2547_v49, %v2043_v56 }
 0x270   :  { %1055 = vrot.lane.b32.xlu1 %v807_v0, %s1749_s25  ;;  %957 = vrot.lane.b32.xlu2 %v888_v33, %s1747_s12 }
 0x275   :  { %v924_v53 = vpop.permute.xlu1 %923 }
 0x276   :  { %v991_v37 = vadd.f32 %v924_v53, %v831_v57 }
 0x277   :  { %955 = vrot.lane.b32.xlu0 %v887_v54, %s1747_s12  ;;  %v837_v54 = vmul.f32 %v2543_v28, %v2037_v45 }
 0x278   :  { %1061 = vrot.lane.b32.xlu1 %v810_v27, %s1749_s25  ;;  %1059 = vrot.lane.b32.xlu2 %v809_v40, %s1749_s25  ;;  %v838_v27 = vmul.f32 %v2555_v19, %v2037_v45 }
 0x27f   :  { %961 = vrot.lane.b32.xlu0 %v890_v31, %s1747_s12 }
 0x280   :  { %1218 = vperm.xlu2 %1624, %v988_v44   ;;  %v840_v44 = vmul.f32 %v2547_v49, %v2039_v59 }
 0x287   :  { %1057 = vrot.lane.b32.xlu0 %v808_v42, %s1749_s25 }
 0x28f   :  { %1213 = vperm.xlu0 %1623, %v987_v35   ;;  %v843_v35 = vmul.f32 %v2553_v60, %v2041_v52 }
 0x29a   :  { %v922_v8 = vpop.permute.xlu2 %921 }
 0x29b   :  { %v990_v2 = vadd.f32 %v922_v8, %v830_v11  ;;  %v844_v11 = vmul.f32 %v2547_v49, %v2041_v52  ;;  %v849_v49 = vmul.f32 %v2543_v28, %v2043_v56 }
 0x29d   :  { %1228 = vperm.xlu2 %1624, %v990_v2  }
 0x2a2   :  { %v928_v38 = vpop.permute.xlu2 %927 }
 0x2a3   :  { %v993_v10 = vadd.f32 %v928_v38, %v833_v1 }
 0x2a5   :  { %1243 = vperm.xlu2 %1624, %v993_v10   ;;  %v846_v10 = vmul.f32 %v2555_v19, %v2041_v52 }
 0x2aa   :  { %v934_v55 = vpop.permute.xlu2 %933 }
 0x2ab   :  { %v996_v9 = vadd.f32 %v934_v55, %v836_v18  ;;  %v847_v18 = vmul.f32 %v2553_v60, %v2043_v56 }
 0x2ad   :  { %1258 = vperm.xlu2 %1624, %v996_v9  }
 0x2b2   :  { %v940_v34 = vpop.permute.xlu2 %939  ;;  %v930_v17 = vpop.permute.xlu1 %929 }
 0x2b3   :  { %v999_v32 = vadd.f32 %v940_v34, %v839_v23  ;;  %v994_v36 = vadd.f32 %v930_v17, %v834_v43  ;;  %v850_v34 = vmul.f32 %v2555_v19, %v2043_v56 }
 0x2b5   :  { %1273 = vperm.xlu2 %1624, %v999_v32  }
 0x2b9   :  { %v920_v26 = vpop.permute.xlu0 %919 }
 0x2ba   :  { %v946_v62 = vpop.permute.xlu2 %945  ;;  %v989_v22 = vadd.f32 %v920_v26, %v829_v6  ;;  %v936_v21 = vpop.permute.xlu1 %935 }
 0x2bb   :  { %v1002_v15 = vadd.f32 %v946_v62, %v842_v50  ;;  %v997_v14 = vadd.f32 %v936_v21, %v837_v54 }
 0x2bc   :  { %1223 = vperm.xlu1 %1625, %v989_v22  }
 0x2bd   :  { %1288 = vperm.xlu2 %1624, %v1002_v15  }
 0x2c1   :  { %v926_v24 = vpop.permute.xlu0 %925 }
 0x2c2   :  { %v952_v4 = vpop.permute.xlu2 %951  ;;  %v992_v63 = vadd.f32 %v926_v24, %v832_v20  ;;  %v942_v5 = vpop.permute.xlu1 %941 }
 0x2c3   :  { %v1005_v51 = vadd.f32 %v952_v4, %v845_v39  ;;  %v1000_v58 = vadd.f32 %v942_v5, %v840_v44 }
 0x2c4   :  { %1233 = vperm.xlu1 %1625, %v991_v37   ;;  %1238 = vperm.xlu0 %1623, %v992_v63  }
 0x2c5   :  { %1303 = vperm.xlu2 %1624, %v1005_v51  }
 0x2c9   :  { %v932_v0 = vpop.permute.xlu0 %931 }
 0x2ca   :  { %v958_v33 = vpop.permute.xlu2 %957  ;;  %v995_v46 = vadd.f32 %v932_v0, %v835_v29  ;;  %v948_v31 = vpop.permute.xlu1 %947 }
 0x2cb   :  { %v1008_v7 = vadd.f32 %v958_v33, %v848_v30  ;;  %v1003_v1 = vadd.f32 %v948_v31, %v843_v35 }
 0x2cc   :  { %1248 = vperm.xlu1 %1625, %v994_v36   ;;  %1253 = vperm.xlu0 %1623, %v995_v46  }
 0x2cd   :  { %1318 = vperm.xlu2 %1624, %v1008_v7  }
 0x2d1   :  { %v938_v40 = vpop.permute.xlu0 %937 }
 0x2d2   :  { %v998_v3 = vadd.f32 %v938_v40, %v838_v27  ;;  %v954_v8 = vpop.permute.xlu1 %953  ;;  %v1060_v26 = vpop.permute.xlu2 %1059 }
 0x2d3   :  { %v1006_v9 = vadd.f32 %v954_v8, %v846_v10  ;;  %v1069_v62 = vmul.f32 %v1060_v26, %v2031_v12  ;;  %v1073_v39 = vmul.f32 %v1060_v26, %v2033_v47  ;;  %v1077_v43 = vmul.f32 %v1060_v26, %v2037_v45 }
 0x2d4   :  { %1263 = vperm.xlu1 %1625, %v997_v14   ;;  %1268 = vperm.xlu0 %1623, %v998_v3   ;;  %v1081_v30 = vmul.f32 %v1060_v26, %v2039_v59  ;;  %v1085_v54 = vmul.f32 %v1060_v26, %v2041_v52 }
 0x2d9   :  { %v944_v42 = vpop.permute.xlu0 %943 }
 0x2da   :  { %v1001_v48 = vadd.f32 %v944_v42, %v841_v16  ;;  %v960_v23 = vpop.permute.xlu1 %959  ;;  %v2689_v37 = vpop.permute.xlu2 %1218  ;;  %v1089_v42 = vmul.f32 %v1060_v26, %v2043_v56 }
 0x2db   :  { %v1009_v6 = vadd.f32 %v960_v23, %v849_v49 }
 0x2dc   :  { %1278 = vperm.xlu1 %1625, %v1000_v58   ;;  %1283 = vperm.xlu0 %1623, %v1001_v48  }
 0x2e1   :  { %v950_v2 = vpop.permute.xlu0 %949 }
 0x2e2   :  { %v1004_v38 = vadd.f32 %v950_v2, %v844_v11  ;;  %v1056_v50 = vpop.permute.xlu1 %1055 }
 0x2e3   :  { %v1067_v22 = vmul.f32 %v1056_v50, %v2031_v12  ;;  %v1071_v20 = vmul.f32 %v1056_v50, %v2033_v47  ;;  %v1075_v24 = vmul.f32 %v1056_v50, %v2037_v45  ;;  %v1079_v29 = vmul.f32 %v1056_v50, %v2039_v59 }
 0x2e4   :  { %1293 = vperm.xlu1 %1625, %v1003_v1   ;;  %1298 = vperm.xlu0 %1623, %v1004_v38   ;;  %v1083_v7 = vmul.f32 %v1056_v50, %v2041_v52  ;;  %v1087_v27 = vmul.f32 %v1056_v50, %v2043_v56 }
 0x2e9   :  { %v956_v55 = vpop.permute.xlu0 %955 }
 0x2ea   :  { %v1007_v53 = vadd.f32 %v956_v55, %v847_v18  ;;  %v1062_v28 = vpop.permute.xlu1 %1061 }
 0x2eb   :  { %v1070_v19 = vmul.f32 %v1062_v28, %v2031_v12  ;;  %v1074_v4 = vmul.f32 %v1062_v28, %v2033_v47  ;;  %v1078_v21 = vmul.f32 %v1062_v28, %v2037_v45  ;;  %v1082_v33 = vmul.f32 %v1062_v28, %v2039_v59 }
 0x2ec   :  { %1308 = vperm.xlu1 %1625, %v1006_v9   ;;  %1313 = vperm.xlu0 %1623, %v1007_v53   ;;  %v1086_v40 = vmul.f32 %v1062_v28, %v2041_v52  ;;  %v1090_v16 = vmul.f32 %v1062_v28, %v2043_v56  ;;  %v1028_v53 = vmul.f32 %v2611_v61, %v2031_v12 }
 0x2f1   :  { %v962_v32 = vpop.permute.xlu0 %961 }
 0x2f2   :  { %v1010_v17 = vadd.f32 %v962_v32, %v850_v34 }
 0x2f4   :  { %1323 = vperm.xlu1 %1625, %v1009_v6   ;;  %1328 = vperm.xlu0 %1623, %v1010_v17   ;;  %v1031_v6 = vmul.f32 %v2615_v25, %v2033_v47 }
 0x2f7   :  { %v2697_v51 = vpop.permute.xlu2 %1228 }
 0x2f9   :  { %v1058_v60 = vpop.permute.xlu0 %1057 }
 0x2fa   :  { %v1068_v15 = vmul.f32 %v1058_v60, %v2031_v12  ;;  %v1072_v57 = vmul.f32 %v1058_v60, %v2033_v47  ;;  %v1076_v63 = vmul.f32 %v1058_v60, %v2037_v45  ;;  %v1080_v0 = vmul.f32 %v1058_v60, %v2039_v59 }
 0x2fb   :  { %v1084_v46 = vmul.f32 %v1058_v60, %v2041_v52  ;;  %v1088_v44 = vmul.f32 %v1058_v60, %v2043_v56 }
 0x2fc   :  { %1119 = vrot.lane.b32.xlu1 %v1069_v62, %s1747_s12  ;;  %1115 = vrot.lane.b32.xlu0 %v1067_v22, %s1747_s12  ;;  %v1034_v62 = vmul.f32 %v2622_v41, %v2033_v47 }
 0x2fd   :  { %1117 = vrot.lane.b32.xlu2 %v1068_v15, %s1747_s12 }
 0x2ff   :  { %v2708_v36 = vpop.permute.xlu2 %1243 }
 0x301   :  { %v2725_v14 = vpop.permute.xlu0 %1213 }
 0x304   :  { %1121 = vrot.lane.b32.xlu0 %v1070_v19, %s1747_s12  ;;  %1125 = vrot.lane.b32.xlu1 %v1072_v57, %s1747_s12  ;;  %v1029_v19 = vmul.f32 %v2635_v13, %v2031_v12  ;;  %v1027_v57 = vmul.f32 %v2615_v25, %v2031_v12 }
 0x305   :  { %1123 = vrot.lane.b32.xlu2 %v1071_v20, %s1747_s12 }
 0x307   :  { %v2717_v5 = vpop.permute.xlu2 %1258 }
 0x30c   :  { %1127 = vrot.lane.b32.xlu0 %v1073_v39, %s1747_s12  ;;  %1131 = vrot.lane.b32.xlu1 %v1075_v24, %s1747_s12  ;;  %v1037_v39 = vmul.f32 %v2635_v13, %v2037_v45 }
 0x30d   :  { %1129 = vrot.lane.b32.xlu2 %v1074_v4, %s1747_s12 }
 0x30f   :  { %v2729_v31 = vpop.permute.xlu2 %1273 }
 0x314   :  { %1133 = vrot.lane.b32.xlu0 %v1076_v63, %s1747_s12  ;;  %1137 = vrot.lane.b32.xlu1 %v1078_v21, %s1747_s12 }
 0x315   :  { %1135 = vrot.lane.b32.xlu2 %v1077_v43, %s1747_s12 }
 0x317   :  { %v2741_v35 = vpop.permute.xlu2 %1288 }
 0x31c   :  { %1139 = vrot.lane.b32.xlu0 %v1079_v29, %s1747_s12  ;;  %1143 = vrot.lane.b32.xlu1 %v1081_v30, %s1747_s12  ;;  %v1032_v29 = vmul.f32 %v2611_v61, %v2033_v47  ;;  %v1030_v30 = vmul.f32 %v2622_v41, %v2031_v12  ;;  %v1043_v12 = vmul.f32 %v2615_v25, %v2041_v52 }
 0x31d   :  { %1141 = vrot.lane.b32.xlu2 %v1080_v0, %s1747_s12 }
 0x31f   :  { %v2747_v2 = vpop.permute.xlu2 %1303 }
 0x324   :  { %1145 = vrot.lane.b32.xlu0 %v1082_v33, %s1747_s12  ;;  %1149 = vrot.lane.b32.xlu1 %v1084_v46, %s1747_s12  ;;  %v1040_v33 = vmul.f32 %v2611_v61, %v2039_v59 }
 0x325   :  { %1147 = vrot.lane.b32.xlu2 %v1083_v7, %s1747_s12 }
 0x327   :  { %v2757_v55 = vpop.permute.xlu2 %1318 }
 0x32c   :  { %1151 = vrot.lane.b32.xlu0 %v1085_v54, %s1747_s12  ;;  %1155 = vrot.lane.b32.xlu1 %v1087_v27, %s1747_s12 }
 0x32d   :  { %1153 = vrot.lane.b32.xlu2 %v1086_v40, %s1747_s12 }
 0x32e   :  { %v2727_v3 = vpop.permute.xlu1 %1223 }
 0x334   :  { %1157 = vrot.lane.b32.xlu0 %v1088_v44, %s1747_s12  ;;  %1161 = vrot.lane.b32.xlu1 %v1090_v16, %s1747_s12  ;;  %v1035_v44 = vmul.f32 %v2615_v25, %v2037_v45  ;;  %v1033_v16 = vmul.f32 %v2635_v13, %v2033_v47  ;;  %v1046_v47 = vmul.f32 %v2622_v41, %v2041_v52 }
 0x335   :  { %1159 = vrot.lane.b32.xlu2 %v1089_v42, %s1747_s12 }
 0x336   :  { %v2737_v58 = vpop.permute.xlu1 %1233  ;;  %v2739_v48 = vpop.permute.xlu0 %1238 }
 0x33e   :  { %v2743_v11 = vpop.permute.xlu1 %1248  ;;  %v2745_v8 = vpop.permute.xlu0 %1253 }
 0x346   :  { %v2749_v1 = vpop.permute.xlu1 %1263  ;;  %v2751_v38 = vpop.permute.xlu0 %1268 }
 0x34e   :  { %v2753_v10 = vpop.permute.xlu1 %1278  ;;  %v2755_v18 = vpop.permute.xlu0 %1283 }
 0x356   :  { %v2759_v9 = vpop.permute.xlu1 %1293  ;;  %v2763_v23 = vpop.permute.xlu0 %1298 }
 0x357   :  { %v1118_v49 = vpop.permute.xlu2 %1117 }
 0x358   :  { %v1188_v34 = vadd.f32 %v1118_v49, %v1028_v53 }
 0x35a   :  { %1386 = vperm.xlu1 %1625, %v1188_v34  }
 0x35e   :  { %v2765_v32 = vpop.permute.xlu1 %1308  ;;  %v2769_v17 = vpop.permute.xlu0 %1313 }
 0x35f   :  { %v1124_v50 = vpop.permute.xlu2 %1123 }
 0x360   :  { %v1191_v26 = vadd.f32 %v1124_v50, %v1031_v6 }
 0x362   :  { %1401 = vperm.xlu1 %1625, %v1191_v26   ;;  %v1038_v26 = vmul.f32 %v2622_v41, %v2037_v45 }
 0x366   :  { %v2771_v60 = vpop.permute.xlu1 %1323  ;;  %v2775_v22 = vpop.permute.xlu0 %1328 }
 0x367   :  { %v1130_v15 = vpop.permute.xlu2 %1129 }
 0x368   :  { %v1194_v28 = vadd.f32 %v1130_v15, %v1034_v62  ;;  %v1036_v62 = vmul.f32 %v2611_v61, %v2037_v45  ;;  %v1049_v45 = vmul.f32 %v2635_v13, %v2043_v56 }
 0x36a   :  { %1416 = vperm.xlu1 %1625, %v1194_v28  }
 0x36e   :  { %v1120_v20 = vpop.permute.xlu1 %1119  ;;  %v1116_v24 = vpop.permute.xlu0 %1115 }
 0x36f   :  { %v1189_v4 = vadd.f32 %v1120_v20, %v1029_v19  ;;  %v1136_v63 = vpop.permute.xlu2 %1135  ;;  %v1187_v21 = vadd.f32 %v1116_v24, %v1027_v57  ;;  %v1041_v24 = vmul.f32 %v2635_v13, %v2039_v59 }
 0x370   :  { %v1197_v43 = vadd.f32 %v1136_v63, %v1037_v39 }
 0x371   :  { %1391 = vperm.xlu0 %1623, %v1189_v4   ;;  %1381 = vperm.xlu2 %1624, %v1187_v21   ;;  %v1039_v4 = vmul.f32 %v2615_v25, %v2039_v59 }
 0x372   :  { %1431 = vperm.xlu1 %1625, %v1197_v43  }
 0x376   :  { %v1126_v0 = vpop.permute.xlu1 %1125  ;;  %v1122_v46 = vpop.permute.xlu0 %1121 }
 0x377   :  { %v1192_v7 = vadd.f32 %v1126_v0, %v1032_v29  ;;  %v1142_v54 = vpop.permute.xlu2 %1141  ;;  %v1190_v27 = vadd.f32 %v1122_v46, %v1030_v30  ;;  %v1042_v46 = vmul.f32 %v2622_v41, %v2039_v59  ;;  %v1050_v59 = vmul.f32 %v2622_v41, %v2043_v56 }
 0x378   :  { %v1200_v40 = vadd.f32 %v1142_v54, %v1040_v33  ;;  %v1044_v33 = vmul.f32 %v2611_v61, %v2041_v52 }
 0x379   :  { %1406 = vperm.xlu0 %1623, %v1192_v7   ;;  %1396 = vperm.xlu2 %1624, %v1190_v27  }
 0x37a   :  { %1446 = vperm.xlu1 %1625, %v1200_v40  }
 0x37e   :  { %v1132_v42 = vpop.permute.xlu1 %1131  ;;  %v1128_v53 = vpop.permute.xlu0 %1127 }
 0x37f   :  { %v1195_v49 = vadd.f32 %v1132_v42, %v1035_v44  ;;  %v1148_v34 = vpop.permute.xlu2 %1147  ;;  %v1193_v6 = vadd.f32 %v1128_v53, %v1033_v16  ;;  %v1047_v44 = vmul.f32 %v2615_v25, %v2043_v56  ;;  %v1045_v16 = vmul.f32 %v2635_v13, %v2041_v52  ;;  %v1642_v25 = vld [vmem:[#allocation2] sm:$0xff]  ;;  %v1643_v13 = vld [vmem:[#allocation2 + $0x10] sm:$0xff] }
 0x380   :  { %v1203_v50 = vadd.f32 %v1148_v34, %v1043_v12  ;;  %v1048_v34 = vmul.f32 %v2611_v61, %v2043_v56  ;;  %v1331_v52 = vmul.f32 %v1642_v25, %v2725_v14 }
 0x381   :  { %1421 = vperm.xlu0 %1623, %v1195_v49   ;;  %1411 = vperm.xlu2 %1624, %v1193_v6  }
 0x382   :  { %1461 = vperm.xlu1 %1625, %v1203_v50  }
 0x386   :  { %v1138_v15 = vpop.permute.xlu1 %1137  ;;  %v1134_v28 = vpop.permute.xlu0 %1133 }
 0x387   :  { %v1198_v19 = vadd.f32 %v1138_v15, %v1038_v26  ;;  %v1154_v57 = vpop.permute.xlu2 %1153  ;;  %v1196_v20 = vadd.f32 %v1134_v28, %v1036_v62  ;;  %v1333_v15 = vmul.f32 %v1643_v13, %v2689_v37 }
 0x388   :  { %v1206_v39 = vadd.f32 %v1154_v57, %v1046_v47  ;;  %v1644_v47 = vld [vmem:[#allocation2 + $0x18] sm:$0xff] }
 0x389   :  { %1436 = vperm.xlu0 %1623, %v1198_v19   ;;  %1426 = vperm.xlu2 %1624, %v1196_v20   ;;  %v1334_v28 = vmul.f32 %v1644_v47, %v2689_v37  ;;  %v1645_v19 = vld [vmem:[#allocation2 + $0x8] sm:$0xff]  ;;  %v1648_v37 = vld [vmem:[#allocation2 + $0x40] sm:$0xff] }
 0x38a   :  { %1476 = vperm.xlu1 %1625, %v1206_v39   ;;  %v1332_v41 = vmul.f32 %v1645_v19, %v2725_v14  ;;  %v1649_v14 = vld [vmem:[#allocation2 + $0x48] sm:$0xff]  ;;  %v1658_v19 = vld [vmem:[#allocation2 + $0x20] sm:$0xff] }
 0x38e   :  { %v1144_v63 = vpop.permute.xlu1 %1143  ;;  %v1140_v21 = vpop.permute.xlu0 %1139 }
 0x38f   :  { %v1201_v43 = vadd.f32 %v1144_v63, %v1041_v24  ;;  %v1160_v29 = vpop.permute.xlu2 %1159  ;;  %v1199_v30 = vadd.f32 %v1140_v21, %v1039_v4  ;;  %v1646_v4 = vld [vmem:[#allocation2 + $0x30] sm:$0xff] }
 0x390   :  { %v1209_v0 = vadd.f32 %v1160_v29, %v1049_v45  ;;  %v1337_v63 = vmul.f32 %v1646_v4, %v2697_v51  ;;  %v1647_v45 = vld [vmem:[#allocation2 + $0x38] sm:$0xff]  ;;  %v1340_v29 = vmul.f32 %v1649_v14, %v2737_v58 }
 0x391   :  { %1451 = vperm.xlu0 %1623, %v1201_v43   ;;  %1441 = vperm.xlu2 %1624, %v1199_v30   ;;  %v1338_v21 = vmul.f32 %v1647_v45, %v2697_v51  ;;  %v1339_v43 = vmul.f32 %v1648_v37, %v2737_v58  ;;  %v1651_v51 = vld [vmem:[#allocation2 + $0x68] sm:$0xff]  ;;  %v1653_v58 = vld [vmem:[#allocation2 + $0x78] sm:$0xff] }
 0x392   :  { %1491 = vperm.xlu1 %1625, %v1209_v0  }
 0x396   :  { %v1150_v7 = vpop.permute.xlu1 %1149  ;;  %v1146_v54 = vpop.permute.xlu0 %1145 }
 0x397   :  { %v1204_v27 = vadd.f32 %v1150_v7, %v1044_v33  ;;  %v1202_v40 = vadd.f32 %v1146_v54, %v1042_v46 }
 0x399   :  { %1466 = vperm.xlu0 %1623, %v1204_v27   ;;  %1456 = vperm.xlu2 %1624, %v1202_v40   ;;  %v1650_v27 = vld [vmem:[#allocation2 + $0x60] sm:$0xff] }
 0x39a   :  { %v1343_v40 = vmul.f32 %v1650_v27, %v2708_v36  ;;  %v1665_v27 = vld [vmem:[#allocation2 + $0x58] sm:$0xff] }
 0x39e   :  { %v1156_v42 = vpop.permute.xlu1 %1155  ;;  %v1152_v12 = vpop.permute.xlu0 %1151 }
 0x39f   :  { %v1207_v53 = vadd.f32 %v1156_v42, %v1047_v44  ;;  %v1205_v49 = vadd.f32 %v1152_v12, %v1045_v16  ;;  %v1344_v44 = vmul.f32 %v1651_v51, %v2708_v36  ;;  %v1652_v16 = vld [vmem:[#allocation2 + $0x70] sm:$0xff]  ;;  %v1346_v12 = vmul.f32 %v1653_v58, %v2743_v11  ;;  %v1655_v36 = vld [vmem:[#allocation2 + $0x98] sm:$0xff] }
 0x3a0   :  { %v1345_v42 = vmul.f32 %v1652_v16, %v2743_v11  ;;  %v1350_v25 = vmul.f32 %v1655_v36, %v2717_v5  ;;  %v1657_v11 = vld [vmem:[#allocation2 + $0xa8] sm:$0xff] }
 0x3a1   :  { %1481 = vperm.xlu0 %1623, %v1207_v53   ;;  %1471 = vperm.xlu2 %1624, %v1205_v49  }
 0x3a6   :  { %v1162_v6 = vpop.permute.xlu1 %1161  ;;  %v1158_v50 = vpop.permute.xlu0 %1157 }
 0x3a7   :  { %v1210_v26 = vadd.f32 %v1162_v6, %v1050_v59  ;;  %v1208_v62 = vadd.f32 %v1158_v50, %v1048_v34 }
 0x3a9   :  { %1496 = vperm.xlu0 %1623, %v1210_v26   ;;  %1486 = vperm.xlu2 %1624, %v1208_v62   ;;  %v1654_v26 = vld [vmem:[#allocation2 + $0x90] sm:$0xff] }
 0x3aa   :  { %v1349_v62 = vmul.f32 %v1654_v26, %v2717_v5  ;;  %v1670_v26 = vld [vmem:[#allocation2 + $0x80] sm:$0xff] }
 0x3cb   :  { %v1382_v57 = vpop.permute.xlu2 %1381 }
 0x3cc   :  { %v1387_v56 = vpop.permute.xlu1 %1386  ;;  %v1499_v61 = vadd.f32 %v1382_v57, %v1331_v52  ;;  %v1500_v24 = vadd.f32 %v1382_v57, %v1332_v41  ;;  %v1656_v52 = vld [vmem:[#allocation2 + $0xa0] sm:$0xff]  ;;  %v1335_v41 = vmul.f32 %v1658_v19, %v2727_v3 }
 0x3cd   :  { %v1501_v20 = vadd.f32 %v1387_v56, %v1333_v15  ;;  %v1502_v39 = vadd.f32 %v1387_v56, %v1334_v28  ;;  %v1351_v13 = vmul.f32 %v1656_v52, %v2749_v1  ;;  %v1352_v15 = vmul.f32 %v1657_v11, %v2749_v1  ;;  %v1660_v1 = vld [vmem:[#allocation2 + $0xc0] sm:$0xff]  ;;  %v1671_v52 = vld [vmem:[#allocation2 + $0x88] sm:$0xff] }
 0x3ce   :  { %1547 = vst [vmem:[#allocation5] sm:$0xff] %v1499_v61  ;;  %v1659_v61 = vld [vmem:[#allocation2 + $0x28] sm:$0xff]  ;;  %v1355_v45 = vmul.f32 %v1660_v1, %v2729_v31 }
 0x3cf   :  { %1549 = vst [vmem:[#allocation5 + $0x10] sm:$0xff] %v1501_v20  ;;  %v1336_v20 = vmul.f32 %v1659_v61, %v2727_v3  ;;  %v1663_v3 = vld [vmem:[#allocation2 + $0xd8] sm:$0xff] }
 0x3d0   :  { %1550 = vst [vmem:[#allocation5 + $0x18] sm:$0xff] %v1502_v39 }
 0x3d1   :  { %1548 = vst [vmem:[#allocation5 + $0x8] sm:$0xff] %v1500_v24 }
 0x3d3   :  { %v1397_v30 = vpop.permute.xlu2 %1396 }
 0x3d4   :  { %v1402_v0 = vpop.permute.xlu1 %1401  ;;  %v1505_v33 = vadd.f32 %v1397_v30, %v1337_v63  ;;  %v1506_v54 = vadd.f32 %v1397_v30, %v1338_v21  ;;  %v1661_v21 = vld [vmem:[#allocation2 + $0xc8] sm:$0xff] }
 0x3d5   :  { %v1507_v46 = vadd.f32 %v1402_v0, %v1339_v43  ;;  %v1508_v7 = vadd.f32 %v1402_v0, %v1340_v29  ;;  %v1356_v37 = vmul.f32 %v1661_v21, %v2729_v31  ;;  %v1662_v43 = vld [vmem:[#allocation2 + $0xd0] sm:$0xff]  ;;  %v1358_v29 = vmul.f32 %v1663_v3, %v2753_v10 }
 0x3d6   :  { %1553 = vst [vmem:[#allocation5 + $0x30] sm:$0xff] %v1505_v33  ;;  %v1357_v14 = vmul.f32 %v1662_v43, %v2753_v10  ;;  %v1664_v33 = vld [vmem:[#allocation2 + $0x50] sm:$0xff] }
 0x3d7   :  { %1555 = vst [vmem:[#allocation5 + $0x40] sm:$0xff] %v1507_v46  ;;  %v1341_v46 = vmul.f32 %v1664_v33, %v2739_v48  ;;  %v1666_v10 = vld [vmem:[#allocation2 + $0xf0] sm:$0xff]  ;;  %v1680_v33 = vld [vmem:[#allocation2 + $0x160] sm:$0xff] }
 0x3d8   :  { %1556 = vst [vmem:[#allocation5 + $0x48] sm:$0xff] %v1508_v7  ;;  %v1361_v58 = vmul.f32 %v1666_v10, %v2741_v35 }
 0x3d9   :  { %1554 = vst [vmem:[#allocation5 + $0x38] sm:$0xff] %v1506_v54 }
 0x3db   :  { %v1412_v53 = vpop.permute.xlu2 %1411 }
 0x3dc   :  { %v1417_v49 = vpop.permute.xlu1 %1416  ;;  %v1511_v59 = vadd.f32 %v1412_v53, %v1343_v40  ;;  %v1512_v50 = vadd.f32 %v1412_v53, %v1344_v44  ;;  %v1342_v40 = vmul.f32 %v1665_v27, %v2739_v48  ;;  %v1669_v48 = vld [vmem:[#allocation2 + $0x108] sm:$0xff] }
 0x3dd   :  { %v1513_v34 = vadd.f32 %v1417_v49, %v1345_v42  ;;  %v1514_v6 = vadd.f32 %v1417_v49, %v1346_v12  ;;  %v1667_v12 = vld [vmem:[#allocation2 + $0xf8] sm:$0xff]  ;;  %v1668_v49 = vld [vmem:[#allocation2 + $0x100] sm:$0xff] }
 0x3de   :  { %1559 = vst [vmem:[#allocation5 + $0x60] sm:$0xff] %v1511_v59  ;;  %v1362_v53 = vmul.f32 %v1667_v12, %v2741_v35  ;;  %v1363_v59 = vmul.f32 %v1668_v49, %v2759_v9 }
 0x3df   :  { %1561 = vst [vmem:[#allocation5 + $0x70] sm:$0xff] %v1513_v34  ;;  %v1364_v34 = vmul.f32 %v1669_v48, %v2759_v9  ;;  %v1672_v9 = vld [vmem:[#allocation2 + $0x120] sm:$0xff] }
 0x3e0   :  { %1562 = vst [vmem:[#allocation5 + $0x78] sm:$0xff] %v1514_v6  ;;  %v1367_v19 = vmul.f32 %v1672_v9, %v2747_v2 }
 0x3e1   :  { %1560 = vst [vmem:[#allocation5 + $0x68] sm:$0xff] %v1512_v50 }
 0x3e3   :  { %v1427_v47 = vpop.permute.xlu2 %1426  ;;  %v1392_v28 = vpop.permute.xlu0 %1391 }
 0x3e4   :  { %v1432_v57 = vpop.permute.xlu1 %1431  ;;  %v1517_v56 = vadd.f32 %v1427_v47, %v1349_v62  ;;  %v1518_v4 = vadd.f32 %v1427_v47, %v1350_v25  ;;  %v1503_v5 = vadd.f32 %v1392_v28, %v1335_v41  ;;  %v1504_v63 = vadd.f32 %v1392_v28, %v1336_v20  ;;  %v1673_v41 = vld [vmem:[#allocation2 + $0x128] sm:$0xff] }
 0x3e5   :  { %v1519_v39 = vadd.f32 %v1432_v57, %v1351_v13  ;;  %v1520_v24 = vadd.f32 %v1432_v57, %v1352_v15  ;;  %v1347_v62 = vmul.f32 %v1670_v26, %v2745_v8  ;;  %v1348_v13 = vmul.f32 %v1671_v52, %v2745_v8  ;;  %v1675_v8 = vld [vmem:[#allocation2 + $0x138] sm:$0xff] }
 0x3e6   :  { %1565 = vst [vmem:[#allocation5 + $0x90] sm:$0xff] %v1517_v56  ;;  %v1368_v57 = vmul.f32 %v1673_v41, %v2747_v2  ;;  %v1674_v56 = vld [vmem:[#allocation2 + $0x130] sm:$0xff]  ;;  %v1370_v20 = vmul.f32 %v1675_v8, %v2765_v32 }
 0x3e7   :  { %1567 = vst [vmem:[#allocation5 + $0xa0] sm:$0xff] %v1519_v39  ;;  %v1369_v61 = vmul.f32 %v1674_v56, %v2765_v32  ;;  %v1678_v32 = vld [vmem:[#allocation2 + $0x150] sm:$0xff] }
 0x3e8   :  { %1568 = vst [vmem:[#allocation5 + $0xa8] sm:$0xff] %v1520_v24 }
 0x3e9   :  { %1566 = vst [vmem:[#allocation5 + $0x98] sm:$0xff] %v1518_v4  ;;  %v1676_v4 = vld [vmem:[#allocation2 + $0xb0] sm:$0xff] }
 0x3ea   :  { %1551 = vst [vmem:[#allocation5 + $0x20] sm:$0xff] %v1503_v5  ;;  %v1353_v5 = vmul.f32 %v1676_v4, %v2751_v38 }
 0x3eb   :  { %1552 = vst [vmem:[#allocation5 + $0x28] sm:$0xff] %v1504_v63  ;;  %v1442_v30 = vpop.permute.xlu2 %1441  ;;  %v1407_v0 = vpop.permute.xlu0 %1406 }
 0x3ec   :  { %v1447_v7 = vpop.permute.xlu1 %1446  ;;  %v1523_v54 = vadd.f32 %v1442_v30, %v1355_v45  ;;  %v1524_v31 = vadd.f32 %v1442_v30, %v1356_v37  ;;  %v1509_v16 = vadd.f32 %v1407_v0, %v1341_v46  ;;  %v1510_v42 = vadd.f32 %v1407_v0, %v1342_v40  ;;  %v1677_v45 = vld [vmem:[#allocation2 + $0xb8] sm:$0xff]  ;;  %v1682_v40 = vld [vmem:[#allocation2 + $0xe0] sm:$0xff] }
 0x3ed   :  { %v1525_v51 = vadd.f32 %v1447_v7, %v1357_v14  ;;  %v1526_v44 = vadd.f32 %v1447_v7, %v1358_v29  ;;  %v1354_v21 = vmul.f32 %v1677_v45, %v2751_v38  ;;  %v1373_v29 = vmul.f32 %v1678_v32, %v2757_v55  ;;  %v1679_v30 = vld [vmem:[#allocation2 + $0x158] sm:$0xff]  ;;  %v1681_v38 = vld [vmem:[#allocation2 + $0x168] sm:$0xff] }
 0x3ee   :  { %1571 = vst [vmem:[#allocation5 + $0xc0] sm:$0xff] %v1523_v54  ;;  %v1374_v0 = vmul.f32 %v1679_v30, %v2757_v55  ;;  %v1375_v46 = vmul.f32 %v1680_v33, %v2771_v60  ;;  %v1376_v7 = vmul.f32 %v1681_v38, %v2771_v60  ;;  %v1684_v60 = vld [vmem:[#allocation2 + $0x110] sm:$0xff] }
 0x3ef   :  { %1573 = vst [vmem:[#allocation5 + $0xd0] sm:$0xff] %v1525_v51  ;;  %v1359_v51 = vmul.f32 %v1682_v40, %v2755_v18  ;;  %v1365_v49 = vmul.f32 %v1684_v60, %v2763_v23 }
 0x3f0   :  { %1574 = vst [vmem:[#allocation5 + $0xd8] sm:$0xff] %v1526_v44 }
 0x3f1   :  { %1572 = vst [vmem:[#allocation5 + $0xc8] sm:$0xff] %v1524_v31 }
 0x3f2   :  { %1557 = vst [vmem:[#allocation5 + $0x50] sm:$0xff] %v1509_v16  ;;  %v1683_v16 = vld [vmem:[#allocation2 + $0xe8] sm:$0xff] }
 0x3f3   :  { %1558 = vst [vmem:[#allocation5 + $0x58] sm:$0xff] %v1510_v42  ;;  %v1457_v6 = vpop.permute.xlu2 %1456  ;;  %v1422_v50 = vpop.permute.xlu0 %1421  ;;  %v1360_v42 = vmul.f32 %v1683_v16, %v2755_v18 }
 0x3f4   :  { %v1462_v36 = vpop.permute.xlu1 %1461  ;;  %v1529_v25 = vadd.f32 %v1457_v6, %v1361_v58  ;;  %v1530_v35 = vadd.f32 %v1457_v6, %v1362_v53  ;;  %v1515_v47 = vadd.f32 %v1422_v50, %v1347_v62  ;;  %v1516_v28 = vadd.f32 %v1422_v50, %v1348_v13  ;;  %v1686_v50 = vld [vmem:[#allocation2 + $0x140] sm:$0xff]  ;;  %v1687_v62 = vld [vmem:[#allocation2 + $0x148] sm:$0xff] }
 0x3f5   :  { %v1531_v11 = vadd.f32 %v1462_v36, %v1363_v59  ;;  %v1532_v15 = vadd.f32 %v1462_v36, %v1364_v34  ;;  %v1685_v59 = vld [vmem:[#allocation2 + $0x118] sm:$0xff]  ;;  %v1371_v26 = vmul.f32 %v1686_v50, %v2769_v17  ;;  %v1372_v36 = vmul.f32 %v1687_v62, %v2769_v17 }
 0x3f6   :  { %1577 = vst [vmem:[#allocation5 + $0xf0] sm:$0xff] %v1529_v25  ;;  %v1366_v48 = vmul.f32 %v1685_v59, %v2763_v23 }
 0x3f7   :  { %1579 = vst [vmem:[#allocation5 + $0x100] sm:$0xff] %v1531_v11  ;;  %v1688_v11 = vld [vmem:[#allocation2 + $0x170] sm:$0xff] }
 0x3f8   :  { %1580 = vst [vmem:[#allocation5 + $0x108] sm:$0xff] %v1532_v15  ;;  %v1377_v23 = vmul.f32 %v1688_v11, %v2775_v22  ;;  %v1689_v15 = vld [vmem:[#allocation2 + $0x178] sm:$0xff] }
 0x3f9   :  { %1578 = vst [vmem:[#allocation5 + $0xf8] sm:$0xff] %v1530_v35  ;;  %v1378_v35 = vmul.f32 %v1689_v15, %v2775_v22 }
 0x3fa   :  { %1563 = vst [vmem:[#allocation5 + $0x80] sm:$0xff] %v1515_v47 }
 0x3fb   :  { %1564 = vst [vmem:[#allocation5 + $0x88] sm:$0xff] %v1516_v28  ;;  %v1472_v39 = vpop.permute.xlu2 %1471  ;;  %v1437_v24 = vpop.permute.xlu0 %1436 }
 0x3fc   :  { %v1477_v63 = vpop.permute.xlu1 %1476  ;;  %v1535_v1 = vadd.f32 %v1472_v39, %v1367_v19  ;;  %v1536_v2 = vadd.f32 %v1472_v39, %v1368_v57  ;;  %v1521_v14 = vadd.f32 %v1437_v24, %v1353_v5  ;;  %v1522_v3 = vadd.f32 %v1437_v24, %v1354_v21 }
 0x3fd   :  { %v1537_v37 = vadd.f32 %v1477_v63, %v1369_v61  ;;  %v1538_v43 = vadd.f32 %v1477_v63, %v1370_v20 }
 0x3fe   :  { %1583 = vst [vmem:[#allocation5 + $0x120] sm:$0xff] %v1535_v1 }
 0x3ff   :  { %1585 = vst [vmem:[#allocation5 + $0x130] sm:$0xff] %v1537_v37 }
 0x400   :  { %1586 = vst [vmem:[#allocation5 + $0x138] sm:$0xff] %v1538_v43 }
 0x401   :  { %1584 = vst [vmem:[#allocation5 + $0x128] sm:$0xff] %v1536_v2 }
 0x402   :  { %1569 = vst [vmem:[#allocation5 + $0xb0] sm:$0xff] %v1521_v14 }
 0x403   :  { %1570 = vst [vmem:[#allocation5 + $0xb8] sm:$0xff] %v1522_v3  ;;  %v1487_v54 = vpop.permute.xlu2 %1486  ;;  %v1452_v27 = vpop.permute.xlu0 %1451 }
 0x404   :  { %v1492_v44 = vpop.permute.xlu1 %1491  ;;  %v1541_v31 = vadd.f32 %v1487_v54, %v1373_v29  ;;  %v1542_v55 = vadd.f32 %v1487_v54, %v1374_v0  ;;  %v1527_v12 = vadd.f32 %v1452_v27, %v1359_v51  ;;  %v1528_v53 = vadd.f32 %v1452_v27, %v1360_v42 }
 0x405   :  { %v1543_v10 = vadd.f32 %v1492_v44, %v1375_v46  ;;  %v1544_v58 = vadd.f32 %v1492_v44, %v1376_v7 }
 0x406   :  { %1589 = vst [vmem:[#allocation5 + $0x150] sm:$0xff] %v1541_v31 }
 0x407   :  { %1591 = vst [vmem:[#allocation5 + $0x160] sm:$0xff] %v1543_v10 }
 0x408   :  { %1592 = vst [vmem:[#allocation5 + $0x168] sm:$0xff] %v1544_v58 }
 0x409   :  { %1590 = vst [vmem:[#allocation5 + $0x158] sm:$0xff] %v1542_v55 }
 0x40a   :  { %1575 = vst [vmem:[#allocation5 + $0xe0] sm:$0xff] %v1527_v12 }
 0x40b   :  { %1576 = vst [vmem:[#allocation5 + $0xe8] sm:$0xff] %v1528_v53  ;;  %v1467_v34 = vpop.permute.xlu0 %1466 }
 0x40c   :  { %v1533_v6 = vadd.f32 %v1467_v34, %v1365_v49  ;;  %v1534_v18 = vadd.f32 %v1467_v34, %v1366_v48 }
 0x40e   :  { %1581 = vst [vmem:[#allocation5 + $0x110] sm:$0xff] %v1533_v6 }
 0x40f   :  { %1582 = vst [vmem:[#allocation5 + $0x118] sm:$0xff] %v1534_v18 }
 0x413   :  { %v1482_v25 = vpop.permute.xlu0 %1481 }
 0x414   :  { %v1539_v52 = vadd.f32 %v1482_v25, %v1371_v26  ;;  %v1540_v13 = vadd.f32 %v1482_v25, %v1372_v36 }
 0x416   :  { %1587 = vst [vmem:[#allocation5 + $0x140] sm:$0xff] %v1539_v52 }
 0x417   :  { %1588 = vst [vmem:[#allocation5 + $0x148] sm:$0xff] %v1540_v13 }
 0x41b   :  { %v1497_v47 = vpop.permute.xlu0 %1496 }
 0x41c   :  { %v1545_v28 = vadd.f32 %v1497_v47, %v1377_v23  ;;  %v1546_v17 = vadd.f32 %v1497_v47, %v1378_v35 }
 0x41e   :  { %1593 = vst [vmem:[#allocation5 + $0x170] sm:$0xff] %v1545_v28 }
 0x41f   :  { %1594 = vst [vmem:[#allocation5 + $0x178] sm:$0xff] %v1546_v17 }
 0x420   :  { %1607 = dma.vmem_to_hbm [thread:$0]  %s1600_s5, 6144, %s1602_s8, [#allocation4], %s1743_s20, %s1743_s20, %s1744_s21  }
 0x421   :  { %1740 = dma.done.wait [#allocation4], 6144  }
 0x422   :  { %1741 = vsyncadd [#allocation4], 4294961152 }
 0x423   :  { %1612 = vsyncpa [#allocation3], 1 }
 0x424   :  { %1613 = vsyncpa [#allocation4], 1 }

</bundles_post_ra>
